<compile_context>
chip_gen: v7x
topology: tpu7x:2x2x1
jax: 0.10.0
libtpu: 0.0.40
codegen_flags: <defaults>
</compile_context>

<pallas_src>
import functools
import math

import jax
import jax.numpy as jnp
from jax.experimental import pallas as pl
from jax.experimental.pallas import tpu as pltpu


def _pick_time_chunk(t, v, target_cols=2048):
    # Bound the in-kernel im2col buffer to roughly (K*Cin, target_cols).
    return max(1, min(t, target_cols // max(v, 1)))


def _tconv_stats_kernel(x_ref, w_ref, y_ref, stats_ref, *, t_chunk):
    # x_ref:     (1, Cin, T, V)    one sample, NCHW block (no transpose in glue)
    # w_ref:     (Cout, K*Cin)     taps flattened k-major (matches im2col below)
    # y_ref:     (1, Cout, T*V)    conv output, lane-dense last dim
    # stats_ref: (1, Cout, 2)      per-sample [sum, sum_of_squares] per channel
    _, cin, t, v = x_ref.shape
    cout, kc = w_ref.shape
    k_taps = kc // cin
    pad = (k_taps - 1) // 2

    w = w_ref[...]                                        # (Cout, K*Cin)
    x = x_ref[0]                                          # (Cin, T, V)

    # temporal 'same' zero padding built in VMEM (no HBM pad pass in glue)
    zpad = jnp.zeros((cin, pad, v), x.dtype)
    xp = jnp.concatenate([zpad, x, zpad], axis=1)         # (Cin, T + 2*pad, V)

    s = jnp.zeros((cout, 1), jnp.float32)
    ss = jnp.zeros((cout, 1), jnp.float32)
    for t0 in range(0, t, t_chunk):                       # static chunk loop over time
        tc = min(t_chunk, t - t0)
        # fused im2col: (K*Cin, tc*V); each tap is a shifted time window of xp
        cols = [xp[:, t0 + k: t0 + k + tc, :].reshape(cin, tc * v)
                for k in range(k_taps)]
        b = jnp.concatenate(cols, axis=0)                 # (K*Cin, tc*V)
        yc = jnp.dot(w, b, preferred_element_type=jnp.float32)   # (Cout, tc*V)
        y_ref[0, :, pl.ds(t0 * v, tc * v)] = yc.astype(y_ref.dtype)
        s = s + jnp.sum(yc, axis=1, keepdims=True)
        ss = ss + jnp.sum(yc * yc, axis=1, keepdims=True)

    stats_ref[0] = jnp.concatenate([s, ss], axis=1)       # (Cout, 2)


def _bn_apply_kernel(y_ref, scale_ref, shift_ref, o_ref):
    # y_ref/o_ref: (1, Cout, T*V); scale/shift: (Cout, 1) -> single per-channel FMA
    o_ref[0] = (y_ref[0] * scale_ref[...] + shift_ref[...]).astype(o_ref.dtype)


def temporal_convolution(x, weight, bias, gamma, beta,
                         kernel_size_=9, kernel_size_joint=1, stride=1,
                         eps=1e-5, compute_dtype=jnp.float32, time_chunk=None):
    """Forward of TemporalConvolution: Conv2d((K,1), pad=(K//2,0), stride 1) + train-mode BN.

    x: (N, Cin, T, V) NCHW.  weight: (Cout, Cin, K, 1) as in nn.Conv2d.
    """
    assert kernel_size_joint == 1 and stride == 1          # module defaults
    n, cin, t, v = x.shape
    cout, _, k_taps, _ = weight.shape
    assert k_taps == kernel_size_
    if time_chunk is None:
        time_chunk = _pick_time_chunk(t, v)

    # (Cout, Cin, K, 1) -> (Cout, K, Cin) -> (Cout, K*Cin)   (k-major, matches im2col)
    w2 = jnp.transpose(weight[..., 0], (0, 2, 1)).reshape(cout, k_taps * cin)
    w2 = w2.astype(compute_dtype)
    x_in = x.astype(compute_dtype)

    cparams = pltpu.CompilerParams(
        dimension_semantics=("parallel",),          # 2-TC split on v7x, pipelined grid
        vmem_limit_bytes=32 * 1024 * 1024,          # safe on v5e/v6e/v7x
    )

    # ---- phase 1: temporal conv (fused im2col matmul) + per-sample partial BN stats ----
    y, stats = pl.pallas_call(
        functools.partial(_tconv_stats_kernel, t_chunk=time_chunk),
        grid=(n,),
        in_specs=[
            pl.BlockSpec((1, cin, t, v), lambda i: (i, 0, 0, 0)),
            pl.BlockSpec((cout, k_taps * cin), lambda i: (0, 0)),
        ],
        out_specs=(
            pl.BlockSpec((1, cout, t * v), lambda i: (i, 0, 0)),
            pl.BlockSpec((1, cout, 2), lambda i: (i, 0, 0)),
        ),
        out_shape=(
            jax.ShapeDtypeStruct((n, cout, t * v), jnp.float32),
            jax.ShapeDtypeStruct((n, cout, 2), jnp.float32),
        ),
        compiler_params=cparams,
    )(x_in, w2)

    # ---- tiny global reduction: BN batch statistics over (N, T, V) per channel ----
    cnt = jnp.float32(n * t * v)
    tot = jnp.sum(stats, axis=0)                  # (Cout, 2)
    mean = tot[:, 0] / cnt
    var = tot[:, 1] / cnt - mean * mean           # biased variance (training-mode BN)
    inv = jax.lax.rsqrt(var + jnp.float32(eps))
    # The conv bias is a per-channel constant: training-mode BN mean subtraction cancels
    # it exactly, so it folds away and no bias pass is needed in the kernel.
    g32 = gamma.astype(jnp.float32)
    scale = (g32 * inv).reshape(cout, 1)
    shift = (beta.astype(jnp.float32) - mean * g32 * inv).reshape(cout, 1)

    # ---- phase 2: apply fused per-channel FMA over lane-dense blocks ----
    out = pl.pallas_call(
        _bn_apply_kernel,
        grid=(n,),
        in_specs=[
            pl.BlockSpec((1, cout, t * v), lambda i: (i, 0, 0)),
            pl.BlockSpec((cout, 1), lambda i: (0, 0)),
            pl.BlockSpec((cout, 1), lambda i: (0, 0)),
        ],
        out_specs=pl.BlockSpec((1, cout, t * v), lambda i: (i, 0, 0)),
        out_shape=jax.ShapeDtypeStruct((n, cout, t * v), x.dtype),
        compiler_params=cparams,
    )(y, scale, shift)

    return out.reshape(n, cout, t, v)


def _reference(x, weight, bias, gamma, beta, pad=4):
    """Pure-JAX reference of the PyTorch forward (conv2d + bias + training-mode BN)."""
    y = jax.lax.conv_general_dilated(
        x, weight, window_strides=(1, 1),
        padding=((pad, pad), (0, 0)),
        dimension_numbers=('NCHW', 'OIHW', 'NCHW'))
    y = y + bias[None, :, None, None]
    mean = jnp.mean(y, axis=(0, 2, 3), keepdims=True)
    var = jnp.mean((y - mean) ** 2, axis=(0, 2, 3), keepdims=True)
    return ((y - mean) * jax.lax.rsqrt(var + 1e-5)
            * gamma[None, :, None, None] + beta[None, :, None, None])


if __name__ == "__main__":
    # Small shapes consistent with the module: N, C_in, T (frames), V (joints)
    N, Cin, T, V = 2, 4, 16, 16
    Cout, K = 8, 9

    key = jax.random.PRNGKey(0)
    kx, kw = jax.random.split(key)
    x = jax.random.normal(kx, (N, Cin, T, V), dtype=jnp.float32)

    # weights_init(conv, bs=1): kaiming_normal_(mode='fan_out') => std = sqrt(2/(Cout*K*1)),
    # bias = 0.  BN: weight = 1, bias = 0.
    std = math.sqrt(2.0 / (Cout * K * 1))
    weight = std * jax.random.normal(kw, (Cout, Cin, K, 1), dtype=jnp.float32)
    bias = jnp.zeros((Cout,), dtype=jnp.float32)
    gamma = jnp.ones((Cout,), dtype=jnp.float32)
    beta = jnp.zeros((Cout,), dtype=jnp.float32)

    ref = jax.block_until_ready(_reference(x, weight, bias, gamma, beta))

    # default path (single in-kernel time chunk at this size)
    out = jax.block_until_ready(temporal_convolution(x, weight, bias, gamma, beta))
    assert out.shape == (N, Cout, T, V), out.shape
    assert jnp.allclose(out, ref, atol=1e-4, rtol=1e-4), float(
        jnp.max(jnp.abs(out - ref)))

    # explicitly exercise the in-kernel time-chunking path (2 chunks of 8 frames,
    # 128-lane-aligned chunk writes)
    out2 = jax.block_until_ready(
        temporal_convolution(x, weight, bias, gamma, beta, time_chunk=8))
    assert jnp.allclose(out2, ref, atol=1e-4, rtol=1e-4), float(
        jnp.max(jnp.abs(out2 - ref)))

    print("KERNEL_OK")
</pallas_src>

<mosaic_0001>
module attributes {stable_mosaic.version = 11 : i64} {
  func.func @_tconv_stats_kernel(%arg0: i32, %arg1: memref<1x4x16x16xf32, #tpu.memory_space<vmem>>, %arg2: memref<8x36xf32, #tpu.memory_space<vmem>>, %arg3: memref<1x8x256xf32, #tpu.memory_space<vmem>>, %arg4: memref<1x8x2xf32, #tpu.memory_space<vmem>>) attributes {dimension_semantics = [#tpu.dimension_semantics<parallel>], iteration_bounds = array<i64: 2>, scalar_prefetch = 0 : i64, scratch_operands = 0 : i64, tpu.core_type = #tpu.core_type<tc>, window_params = [{transform_indices = @transform_0, window_bounds = array<i64: 1, 4, 16, 16>}, {pipeline_mode = #tpu.pipeline_mode<synchronous>, transform_indices = @transform_1, window_bounds = array<i64: 8, 36>}, {transform_indices = @transform_2, window_bounds = array<i64: 1, 8, 256>}, {transform_indices = @transform_3, window_bounds = array<i64: 1, 8, 2>}]} {
    %c0 = arith.constant 0 : index
    %c0_0 = arith.constant 0 : index
    %0 = vector.load %arg2[%c0, %c0_0] : memref<8x36xf32, #tpu.memory_space<vmem>>, vector<8x36xf32>
    %c0_1 = arith.constant 0 : index
    %c0_2 = arith.constant 0 : index
    %c0_3 = arith.constant 0 : index
    %c0_4 = arith.constant 0 : index
    %1 = vector.load %arg1[%c0_1, %c0_2, %c0_3, %c0_4] : memref<1x4x16x16xf32, #tpu.memory_space<vmem>>, vector<1x4x16x16xf32>
    %2 = vector.shape_cast %1 : vector<1x4x16x16xf32> to vector<4x16x16xf32>
    %cst = arith.constant 0.000000e+00 : f32
    %3 = vector.broadcast %cst : f32 to vector<4x4x16xf32>
    %4 = tpu.concatenate %3, %2, %3 in 1 : vector<4x4x16xf32>, vector<4x16x16xf32>, vector<4x4x16xf32> -> vector<4x24x16xf32>
    %cst_5 = arith.constant 0.000000e+00 : f32
    %5 = vector.broadcast %cst_5 : f32 to vector<8x1xf32>
    %cst_6 = arith.constant 0.000000e+00 : f32
    %6 = vector.broadcast %cst_6 : f32 to vector<8x1xf32>
    %7 = vector.extract_strided_slice %4 {offsets = [0, 0, 0], sizes = [4, 16, 16], strides = [1, 1, 1]} : vector<4x24x16xf32> to vector<4x16x16xf32>
    %8 = vector.shape_cast %7 : vector<4x16x16xf32> to vector<4x256xf32>
    %9 = vector.extract_strided_slice %4 {offsets = [0, 1, 0], sizes = [4, 16, 16], strides = [1, 1, 1]} : vector<4x24x16xf32> to vector<4x16x16xf32>
    %10 = vector.shape_cast %9 : vector<4x16x16xf32> to vector<4x256xf32>
    %11 = vector.extract_strided_slice %4 {offsets = [0, 2, 0], sizes = [4, 16, 16], strides = [1, 1, 1]} : vector<4x24x16xf32> to vector<4x16x16xf32>
    %12 = vector.shape_cast %11 : vector<4x16x16xf32> to vector<4x256xf32>
    %13 = vector.extract_strided_slice %4 {offsets = [0, 3, 0], sizes = [4, 16, 16], strides = [1, 1, 1]} : vector<4x24x16xf32> to vector<4x16x16xf32>
    %14 = vector.shape_cast %13 : vector<4x16x16xf32> to vector<4x256xf32>
    %15 = vector.extract_strided_slice %4 {offsets = [0, 4, 0], sizes = [4, 16, 16], strides = [1, 1, 1]} : vector<4x24x16xf32> to vector<4x16x16xf32>
    %16 = vector.shape_cast %15 : vector<4x16x16xf32> to vector<4x256xf32>
    %17 = vector.extract_strided_slice %4 {offsets = [0, 5, 0], sizes = [4, 16, 16], strides = [1, 1, 1]} : vector<4x24x16xf32> to vector<4x16x16xf32>
    %18 = vector.shape_cast %17 : vector<4x16x16xf32> to vector<4x256xf32>
    %19 = vector.extract_strided_slice %4 {offsets = [0, 6, 0], sizes = [4, 16, 16], strides = [1, 1, 1]} : vector<4x24x16xf32> to vector<4x16x16xf32>
    %20 = vector.shape_cast %19 : vector<4x16x16xf32> to vector<4x256xf32>
    %21 = vector.extract_strided_slice %4 {offsets = [0, 7, 0], sizes = [4, 16, 16], strides = [1, 1, 1]} : vector<4x24x16xf32> to vector<4x16x16xf32>
    %22 = vector.shape_cast %21 : vector<4x16x16xf32> to vector<4x256xf32>
    %23 = vector.extract_strided_slice %4 {offsets = [0, 8, 0], sizes = [4, 16, 16], strides = [1, 1, 1]} : vector<4x24x16xf32> to vector<4x16x16xf32>
    %24 = vector.shape_cast %23 : vector<4x16x16xf32> to vector<4x256xf32>
    %25 = tpu.concatenate %8, %10, %12, %14, %16, %18, %20, %22, %24 in 0 : vector<4x256xf32>, vector<4x256xf32>, vector<4x256xf32>, vector<4x256xf32>, vector<4x256xf32>, vector<4x256xf32>, vector<4x256xf32>, vector<4x256xf32>, vector<4x256xf32> -> vector<36x256xf32>
    %cst_7 = arith.constant dense<0.000000e+00> : vector<8x256xf32>
    %26 = tpu.matmul %0, %25, %cst_7 {dimension_numbers = #tpu.dot_dimension_numbers<[1], [0], [0], [1], [0, 0, 1, 1], [], []>} : vector<8x36xf32>, vector<36x256xf32>, vector<8x256xf32> -> vector<8x256xf32>
    %c0_8 = arith.constant 0 : index
    %c0_9 = arith.constant 0 : index
    %c0_10 = arith.constant 0 : index
    %27 = vector.load %arg3[%c0_8, %c0_9, %c0_10] : memref<1x8x256xf32, #tpu.memory_space<vmem>>, vector<1x8x256xf32>
    %28 = vector.shape_cast %27 : vector<1x8x256xf32> to vector<8x256xf32>
    %29 = vector.shape_cast %26 : vector<8x256xf32> to vector<1x8x256xf32>
    tpu.vector_store %arg3[%c0_8, %c0_9, %c0_10], %29 {strides = array<i32>} : memref<1x8x256xf32, #tpu.memory_space<vmem>>, vector<1x8x256xf32>,
    %cst_11 = arith.constant dense<0.000000e+00> : vector<8xf32>
    %30 = vector.multi_reduction <add>, %26, %cst_11 [1] : vector<8x256xf32> to vector<8xf32>
    %31 = vector.shape_cast %30 : vector<8xf32> to vector<8x1xf32>
    %32 = arith.addf %5, %31 : vector<8x1xf32>
    %33 = arith.mulf %26, %26 : vector<8x256xf32>
    %cst_12 = arith.constant dense<0.000000e+00> : vector<8xf32>
    %34 = vector.multi_reduction <add>, %33, %cst_12 [1] : vector<8x256xf32> to vector<8xf32>
    %35 = vector.shape_cast %34 : vector<8xf32> to vector<8x1xf32>
    %36 = arith.addf %6, %35 : vector<8x1xf32>
    %37 = tpu.concatenate %32, %36 in 1 : vector<8x1xf32>, vector<8x1xf32> -> vector<8x2xf32>
    %c0_13 = arith.constant 0 : index
    %c0_14 = arith.constant 0 : index
    %c0_15 = arith.constant 0 : index
    %38 = vector.load %arg4[%c0_13, %c0_14, %c0_15] : memref<1x8x2xf32, #tpu.memory_space<vmem>>, vector<1x8x2xf32>
    %39 = vector.shape_cast %38 : vector<1x8x2xf32> to vector<8x2xf32>
    %40 = vector.shape_cast %37 : vector<8x2xf32> to vector<1x8x2xf32>
    tpu.vector_store %arg4[%c0_13, %c0_14, %c0_15], %40 {strides = array<i32>} : memref<1x8x2xf32, #tpu.memory_space<vmem>>, vector<1x8x2xf32>,
    return
  }
  func.func @transform_0(%arg0: i32) -> (i32, i32, i32, i32) {
    %c0_i32 = arith.constant 0 : i32
    %c0_i32_0 = arith.constant 0 : i32
    %c0_i32_1 = arith.constant 0 : i32
    %c0_i32_2 = arith.constant 0 : i32
    return %arg0, %c0_i32, %c0_i32_0, %c0_i32_1 : i32, i32, i32, i32
  }
  func.func @transform_1(%arg0: i32) -> (i32, i32) {
    %c0_i32 = arith.constant 0 : i32
    %c0_i32_0 = arith.constant 0 : i32
    %c0_i32_1 = arith.constant 0 : i32
    return %c0_i32, %c0_i32_0 : i32, i32
  }
  func.func @transform_2(%arg0: i32) -> (i32, i32, i32) {
    %c0_i32 = arith.constant 0 : i32
    %c0_i32_0 = arith.constant 0 : i32
    %c0_i32_1 = arith.constant 0 : i32
    return %arg0, %c0_i32, %c0_i32_0 : i32, i32, i32
  }
  func.func @transform_3(%arg0: i32) -> (i32, i32, i32) {
    %c0_i32 = arith.constant 0 : i32
    %c0_i32_0 = arith.constant 0 : i32
    %c0_i32_1 = arith.constant 0 : i32
    return %arg0, %c0_i32, %c0_i32_0 : i32, i32, i32
  }
}

</mosaic_0001>

<bundles_post_ra>
// kernel: tpu_custom_call.1
= control target key start
LH: loop header
LB: loop body
LE: loop exit
PB: predicated region body
PF: predicated region fallthrough
CT: control target
= control target key end

     0   :  { %9 = vsyncpa [#allocation3], 0  ;;  %s4513_s0 = inlined_call_operand.hbm [shape: f32[2,4,16,16], index: 0, kind: input, shape index: {}]   ;;  %s4514_s1 = inlined_call_operand.hbm [shape: f32[8,36], index: 1, kind: input, shape index: {}]   ;;  %s4515_s2 = inlined_call_operand.hbm [shape: f32[2,8,256], index: 2, kind: output, shape index: {0}]   ;;  %s4516_s3 = inlined_call_operand.vmem [shape: f32[2,8,2], index: 3, kind: output, shape index: {1}]  }
   0x1   :  { %11 = vsyncpa [#allocation3 + $0x1], 0 }
   0x2   :  { %12 = vsyncpa [#allocation6], 0 }
   0x3   :  { %13 = vsyncpa [#allocation4], 0 }
   0x4   :  { %15 = vsyncpa [#allocation4 + $0x1], 0  ;;  %s2995_s12 = smov 0   ;;  %s2997_s13 = smov 0  }
   0x5   :  { %s2999_s14 = smov 0   ;;  %s3001_s15 = smov 0  }
   0x6 LB: > { %s3016_s16 = sadd.s32 4294967295, %s2958_s15   ;;  %s2486_s17 = sadd.s32 4294967294, %s2958_s15   ;;  %s2958_s15 = sphi %s3001_s15, %s4628_s15   ;;  %s2954_s14 = sphi %s2999_s14, %s4627_s14   ;;  %s2950_s13 = sphi %s2997_s13, %s4626_s13   ;;  %s2946_s12 = sphi %s2995_s12, %s4625_s12  }
   0x7   : > { %s3020_s18 = sadd.s32 1, %s2958_s15   ;;  %s28_s19 = sadd.s32 1, %s2954_s14 }
   0x8   : > { %s25_s20 = ssub.s32 %s2958_s15, %s3020_s18  ;;  %p35_p0 = scmp.ne.s32.totalorder %s2954_s14, %s2950_s13 }
   0x9   : > { %p26_p1 = scmp.eq.s32.totalorder %s25_s20, 0  ;;  %p36_p2 = scmp.eq.s32.totalorder %s2958_s15, 0 }
   0xa   : > { %p41_p3 = scmp.ne.s32.totalorder %s2950_s13, %s2946_s12  ;;  %p4517_p4 = scmp.eq.s32.totalorder %s3016_s16, 0 }
   0xb   : > { %s3032_s21 = scalar_select %p26_p1, %s2954_s14, %s28_s19  }
   0xc   : > { %p3034_p5 = por %p36_p2, %p35_p0  ;;  %p3040_p6 = por %p4517_p4, %p41_p3 }
   0xd   : > { %p86_p7 = scmp.eq.s32.totalorder %s3016_s16, 1  ;;  %p92_p8 = scmp.eq.s32.totalorder %s2486_s17, 1 }
   0xe   : > { %s4550_s23 = scalar_select %p3040_p6, 1, 0 }
   0xf   : > { %p2487_p9 = scmp.ge.s32.totalorder %s2958_s15, 1  ;;  %p125_p10 = scmp.lt.s32.totalorder %s2958_s15, 3 }
  0x10   : > { %p3047_p11 = por %p86_p7, %p35_p0  ;;  %p3051_p12 = por %p92_p8, %p41_p3 }
  0x11   : > { %p3055_p13 = pnand %p2487_p9, %p125_p10  ;;  %s2960_s27 = smov [#allocation5]  }
  0x12   : > { %s4551_s24 = scalar_select %p3047_p11, 1, 0 }
  0x13   : > { %s4552_s25 = scalar_select %p3051_p12, 1, 0 }
  0x14   : > { %s4553_s26 = scalar_select %p3055_p13, 1, 0 }
  0x15   : > { %p2524_p2 = pneg %p3055_p13  ;;  %s138_s28 = sshll.u32 %s2960_s27, 4  ;;  %s139_s28 = int_to_ptr.vmem [resolvable:$true] %s138_s28 }
  0x16   : > { %p2537_p4 = scmp.lt.s32.totalorder %s2958_s15, 2  ;;  %p4554_p0 = scmp.eq.s32.totalorder %s3016_s16, 0 }
  0x17   : > { %s149_s30 = sand.u32 1, %s2954_s14   ;;  %s2830_s8 = scalar_lea.hbm %s4514_s1, 128 }
  0x18   : > { %p3065_p7 = pnand %p2524_p2, %p4554_p0  ;;  %p3072_p3 = pnand %p2537_p4, %p3034_p5 }
  0x19   : > { %s2490_s5 = sshll.u32 %s149_s30, 6  ;;  %p2831_p8 = scmp.ne.s32.totalorder %s4514_s1, %s2830_s8 }
  0x1a   : > { %s4556_s4 = scalar_select %p3072_p3, 1, 0 }
  0x1b   : > { %p2832_p9 = pneg %p3065_p7  ;;  %p2837_p4 = scmp.lt.u32.totalorder %s2830_s8, %s4514_s1 }
  0x1d   : > { %p2833_p10 = pnand %p2832_p9, %p2831_p8 }
  0x1f   : > { %p2834_p2 = pneg %p2833_p10 }
  0x21   : > { %p2839_p5 = pnand %p2837_p4, %p2834_p2 }
  0x23   : > { %2842 = shalt.err (!%p2839_p5)
}
  0x24   : > { %s2843_s19 = scalar_lea.vmem %s139_s28, 128  ;;  %p2851_p11 = scmp.lt.s32.totalorder %s139_s28, %s139_s28 }
  0x25   : > { %p2844_p0 = scmp.ne.s32.totalorder %s139_s28, %s2843_s19  ;;  %p2852_p6 = scmp.lt.s32.totalorder %s2843_s19, %s2843_s19 }
  0x27   : > { %p2846_p1 = pnand %p2844_p0, %p2832_p9  ;;  %p2853_p13 = por %p2852_p6, %p2851_p11 }
  0x29   : > { %p2847_p12 = pneg %p2846_p1 }
  0x2b   : > { %p2854_p3 = pnand %p2853_p13, %p2847_p12 }
  0x2d   : > { %2857 = shalt.err (!%p2854_p3)
}
  0x2e   : > { %2527 = dma.hbm_to_vmem [thread:$0]  (!%p3065_p7), %s4514_s1, 128, %s139_s28, [#allocation6]  }
  0x2f   : > { %s2506_s27 = sshll.u32 %s2958_s15, 10  ;;  %s153_s6 = scalar_lea.vmem [#allocation2], %s2490_s5 }
  0x30   : > { %s160_s7 = sshll.u32 %s153_s6, 4  ;;  %s3096_s10 = scalar_lea.hbm %s4513_s0, %s2506_s27  ;;  %s3098_s7 = int_to_ptr.vmem [resolvable:$true] %s160_s7 }
  0x31   : > { %s3100_s29 = scalar_lea.sflag [#allocation3], %s149_s30  ;;  %s2858_s11 = scalar_lea.hbm %s3096_s10, 1024 }
  0x32   : > { %p2859_p6 = scmp.ne.s32.totalorder %s3096_s10, %s2858_s11  ;;  %p4557_p11 = scmp.ne.s32.totalorder %s4556_s4, 0 }
  0x33   : > { %s2863_s17 = scalar_lea.hbm %s4513_s0, 2048  ;;  %p2864_p7 = scmp.lt.u32.totalorder %s3096_s10, %s4513_s0 }
  0x34   : > { %p2860_p12 = pneg %p4557_p11  ;;  %p2865_p3 = scmp.lt.u32.totalorder %s2863_s17, %s2858_s11 }
  0x35   : > { %p2867_p9 = scmp.lt.u32.totalorder %s2858_s11, %s3096_s10 }
  0x36   : > { %p2861_p13 = pnand %p2860_p12, %p2859_p6  ;;  %p2866_p8 = por %p2865_p3, %p2864_p7 }
  0x38   : > { %p2862_p1 = pneg %p2861_p13  ;;  %p2868_p10 = por %p2867_p9, %p2866_p8 }
  0x3a   : > { %p2869_p2 = pnand %p2868_p10, %p2862_p1 }
  0x3c   : > { %2872 = shalt.err (!%p2869_p2)
}
  0x3d   : > { %s2873_s30 = scalar_lea.vmem %s3098_s7, 1024  ;;  %s2961_s22 = smov [#allocation2]  }
  0x3e   : > { %p2874_p4 = scmp.ne.s32.totalorder %s3098_s7, %s2873_s30  ;;  %s2878_s27 = sshll.u32 %s2961_s22, 4  ;;  %s2879_s27 = int_to_ptr.vmem [resolvable:$false] %s2878_s27 }
  0x3f   : > { %s2880_s6 = scalar_lea.vmem %s2879_s27, 2048  ;;  %p2881_p6 = scmp.lt.s32.totalorder %s3098_s7, %s2879_s27 }
  0x40   : > { %p2876_p5 = pnand %p2874_p4, %p2860_p12  ;;  %p2882_p13 = scmp.lt.s32.totalorder %s2880_s6, %s2873_s30 }
  0x42   : > { %p2877_p0 = pneg %p2876_p5  ;;  %p2883_p7 = por %p2882_p13, %p2881_p6 }
  0x44   : > { %p2884_p3 = pnand %p2883_p7, %p2877_p0 }
  0x46   : > { %2887 = shalt.err (!%p2884_p3)
}
  0x47   : > { %s2962_s8 = smov 128   ;;  %s2963_s9 = smov 8  }
  0x48   : > { %2531 = dma.hbm_to_vmem [thread:$0]  (!%p4557_p11), %s3096_s10, 1024, %s3098_s7, %s3100_s29, %s2962_s8, %s2962_s8, %s2963_s9  }
  0x49   : > { %p4558_p12 = scmp.ne.s32.totalorder %s4553_s26, 0 }
  0x4b   : > { %172 = sbr.rel (%p4558_p12) target bundleno = 761 (0x2f9), region = 28 }
  0x52   : > { %s3131_s11 = sand.u32 1, %s2950_s13   ;;  %p4559_p1 = scmp.ne.s32.totalorder %s4550_s23, 0 }
  0x53   : > { %s2494_s28 = sshll.u32 %s3131_s11, 6  ;;  %s175_s5 = scalar_lea.sflag [#allocation3], %s3131_s11 }
  0x54   : > { %s178_s17 = scalar_lea.vmem [#allocation2], %s2494_s28 }
  0x55   : > { %2933 = dma.done.wait (%p4559_p1), %s175_s5, 1024  }
  0x56   : > { %2935 = vsyncadd (%p4559_p1), %s175_s5, 4294966272  ;;  %p4560_p8 = scmp.eq.s32.totalorder %s3016_s16, 0 }
  0x58   : > { %2937 = dma.done.wait (%p4560_p8), [#allocation6], 128   ;;  %p4561_p11 = pmov %p4560_p8 }
  0x59   : > { %v268_v0 = vlaneseq  ;;  %v2964_v1 = vmov 1983009808   ;;  %v2965_v3 = vmov 1934713408   ;;  %v4522_v5 = vmov 0.0   ;;  %v214_v9 = vld [vmem:[%s178_s17] sm:$0xff] }
  0x5a   : > { %2939 = vsyncadd (%p4561_p11), [#allocation6], 4294967168  ;;  %v266_v2 = vunpack.c.l.s4 %v2964_v1  ;;  %v298_v4 = vunpack.c.l.s4 %v2965_v3  ;;  %2337 = vmatprep.mubr.f32.mxu0 %v4522_v5  ;;  %v215_v10 = vld [vmem:[%s178_s17 + $0x8] sm:$0xff]  ;;  %v216_v11 = vld [vmem:[%s178_s17 + $0x10] sm:$0xff]  ;;  %vm230_vm0 = vcmask 1043456   ;;  %vm484_vm1 = vcmask 1046528  }
  0x5b   : > { %v269_v7 = vshrl.u32 %v268_v0, 7  ;;  %v217_v12 = vld [vmem:[%s178_s17 + $0x18] sm:$0xff]  ;;  %v218_v13 = vld [vmem:[%s178_s17 + $0x20] sm:$0xff]  ;;  %v219_v14 = vld [vmem:[%s178_s17 + $0x28] sm:$0xff]  ;;  %v231_v15 = vrot.slane %v214_v9, 4  ;;  %v232_v16 = vrot.slane %v215_v10, 4 }
  0x5c   : > { %v267_v6 = vunpack.c.0.s8 %v266_v2  ;;  %v299_v8 = vunpack.c.0.s8 %v298_v4  ;;  %v234_v17 = vrot.slane %v216_v11, 4  ;;  %v220_v19 = vld [vmem:[%s178_s17 + $0x30] sm:$0xff]  ;;  %v221_v20 = vld [vmem:[%s178_s17 + $0x38] sm:$0xff]  ;;  %v235_v21 = vrot.slane %v217_v12, 4  ;;  %s2967_s23 = smov 32   ;;  %s2968_s26 = smov 48  }
  0x5d   : > { %v237_v22 = vrot.slane %v218_v13, 4  ;;  %v238_v23 = vrot.slane %v219_v14, 4  ;;  %vm954_vm2 = vcmask 1044480   ;;  %v3149_v25 = vsel %vm230_vm0, %v231_v15, %v232_v16  ;;  %s2969_s4 = smov 16   ;;  %s2970_s7 = smov 64  }
  0x5e   : > { %v3144_v18 = vsub.s32 %v267_v6, %v269_v7  ;;  %v3146_v24 = vsub.s32 %v299_v8, %v269_v7  ;;  %v240_v26 = vrot.slane %v220_v19, 4  ;;  %v241_v27 = vrot.slane %v221_v20, 4  ;;  %s2971_s10 = smov 80   ;;  %s2972_s29 = smov 96  }
  0x5f   : > { %v3152_v28 = vsel %vm230_vm0, 0.0, %v231_v15  ;;  %v3155_v29 = vsel %vm230_vm0, %v234_v17, %v235_v21  ;;  %v3158_v30 = vsel %vm230_vm0, %v237_v22, %v238_v23  ;;  %v3161_v31 = vsel %vm230_vm0, 0.0, %v234_v17  ;;  %s2973_s19 = smov 112   ;;  %s2496_s20 = sshll.u32 %s3131_s11, 4 }
  0x60   : > { %v3164_v32 = vsel %vm230_vm0, 0.0, %v237_v22  ;;  %v3167_v33 = vsel %vm230_vm0, %v240_v26, %v241_v27  ;;  %v3170_v34 = vsel %vm230_vm0, 0.0, %v240_v26  ;;  %v3173_v35 = vsel %vm230_vm0, %v232_v16, 0.0  ;;  %s202_s30 = scalar_lea.vmem [#allocation7], %s2496_s20  ;;  %s2507_s27 = sshll.u32 %s3016_s16, 8 }
  0x61   : > { %v3176_v36 = vsel %vm230_vm0, %v235_v21, 0.0  ;;  %v3179_v37 = vsel %vm230_vm0, %v238_v23, 0.0  ;;  %v3182_v38 = vsel %vm230_vm0, %v241_v27, 0.0  ;;  %v331_v39 = vcombine.low %v3149_v25, %v3158_v30  ;;  %s2379_s22 = sshll.u32 %s202_s30, 4  ;;  %s2377_s9 = scalar_lea.hbm %s4515_s2, %s2507_s27  ;;  %s4467_s22 = int_to_ptr.vmem [resolvable:$true] %s2379_s22 }
  0x62   : > { %v347_v40 = vcombine.low %v3155_v29, %v3167_v33  ;;  %v485_v41 = vrot.slane %v3152_v28, 1  ;;  %v486_v42 = vrot.slane %v3149_v25, 1  ;;  %v490_v43 = vrot.slane %v3161_v31, 1  ;;  %s2361_s28 = scalar_lea.sflag [#allocation4], %s3131_s11  ;;  %s2888_s5 = scalar_lea.vmem %s4467_s22, 256 }
  0x63   : > { %v491_v44 = vrot.slane %v3155_v29, 1  ;;  %v339_v45 = vrot.slane %v331_v39, %v3144_v18  ;;  %v495_v47 = vrot.slane %v3164_v32, 1  ;;  %v496_v48 = vrot.slane %v3158_v30, 1  ;;  %p2889_p9 = scmp.ne.s32.totalorder %s4467_s22, %s2888_s5  ;;  %p4622_p10 = scmp.ne.s32.totalorder %s4551_s24, 0 }
  0x64   : > { %v355_v46 = vrot.slane %v347_v40, %v3144_v18  ;;  %v3197_v49 = vsel %vm484_vm1, %v485_v41, %v486_v42  ;;  %v500_v51 = vrot.slane %v3170_v34, 1  ;;  %v501_v52 = vrot.slane %v3167_v33, 1  ;;  %s2974_s17 = smov [#allocation7]  }
  0x65   : > { %v3200_v50 = vsel %vm484_vm1, %v490_v43, %v491_v44  ;;  %v3205_v55 = vsel %vm484_vm1, %v495_v47, %v496_v48  ;;  %v955_v56 = vrot.slane %v3152_v28, 3  ;;  %v956_v59 = vrot.slane %v3149_v25, 3  ;;  %p2890_p2 = pnand %p2889_p9, %p4622_p10 }
  0x66   : > { %v364_v53 = vcombine.high %v339_v45, %v355_v46  ;;  %v363_v54 = vcombine.low %v339_v45, %v355_v46  ;;  %v3209_v57 = vsel %vm484_vm1, %v500_v51, %v501_v52  ;;  %v513_v58 = vcombine.low %v3197_v49, %v3205_v55 }
  0x67   : > { %v960_v60 = vrot.slane %v3161_v31, 3  ;;  %v529_v63 = vcombine.low %v3200_v50, %v3209_v57  ;;  %v961_v0 = vrot.slane %v3155_v29, 3  ;;  %v3226_v2 = vsel %vm954_vm2, %v955_v56, %v956_v59  ;;  %p2891_p4 = pneg %p2890_p2 }
  0x68   : > { %v378_v61 = vrot.slane %v364_v53, %v3146_v24  ;;  %v3217_v62 = vrot.slane %v363_v54, %v3146_v24  ;;  %v3223_v1 = vrot.slane %v513_v58, %v3144_v18  ;;  %v965_v3 = vrot.slane %v3164_v32, 3 }
  0x69   : > { %v966_v4 = vrot.slane %v3158_v30, 3  ;;  %v3235_v8 = vrot.slane %v529_v63, %v3144_v18  ;;  %v3238_v9 = vsel %vm954_vm2, %v960_v60, %v961_v0  ;;  %v970_v11 = vrot.slane %v3170_v34, 3 }
  0x6a   : > { %4562 = vst [vmem:[#allocation11_spill] sm:$0xff] %v3217_v62  ;;  %432 = vrot.lane.b32.xlu1 %v378_v61, %s2967_s23  ;;  %v396_v6 = vcombine.high %v378_v61, %v4522_v5  ;;  %v395_v7 = vcombine.high %v3217_v62, %v4522_v5  ;;  %v971_v12 = vrot.slane %v3167_v33, 3  ;;  %v488_v13 = vrot.slane %v3173_v35, 1 }
  0x6b   : > { %v3241_v10 = vsel %vm954_vm2, %v965_v3, %v966_v4  ;;  %v546_v14 = vcombine.high %v3223_v1, %v3235_v8  ;;  %v493_v16 = vrot.slane %v3176_v36, 1  ;;  %v498_v17 = vrot.slane %v3179_v37, 1 }
  0x6c   : > { %436 = vrot.lane.b32.xlu0 %v396_v6, %s2968_s26  ;;  %v983_v15 = vcombine.low %v3226_v2, %v3241_v10  ;;  %v3254_v19 = vsel %vm954_vm2, %v970_v11, %v971_v12  ;;  %v489_v20 = vsel %vm484_vm1, %v486_v42, %v488_v13  ;;  %v503_v21 = vrot.slane %v3182_v38, 1 }
  0x6d   : > { %v958_v22 = vrot.slane %v3173_v35, 3  ;;  %v3261_v23 = vrot.slane %v546_v14, %v3146_v24  ;;  %v999_v27 = vcombine.low %v3238_v9, %v3254_v19  ;;  %v494_v39 = vsel %vm484_vm1, %v491_v44, %v493_v16 }
  0x6e   : > { %428 = vrot.lane.b32.xlu1 %v395_v7, %s2969_s4  ;;  %v991_v26 = vrot.slane %v983_v15, %v3144_v18  ;;  %v499_v40 = vsel %vm484_vm1, %v496_v48, %v498_v17  ;;  %v504_v41 = vsel %vm484_vm1, %v501_v52, %v503_v21  ;;  %v963_v43 = vrot.slane %v3176_v36, 3 }
  0x6f   : > { %v959_v42 = vsel %vm954_vm2, %v956_v59, %v958_v22  ;;  %v1007_v45 = vrot.slane %v999_v27, %v3144_v18  ;;  %v581_v46 = vcombine.low %v489_v20, %v499_v40  ;;  %v597_v47 = vcombine.low %v494_v39, %v504_v41 }
  0x70   : > { %v968_v51 = vrot.slane %v3179_v37, 3  ;;  %v964_v53 = vsel %vm954_vm2, %v961_v0, %v963_v43  ;;  %v973_v54 = vrot.slane %v3182_v38, 3  ;;  %v582_v56 = vcombine.high %v489_v20, %v499_v40 }
  0x71   : > { %v598_v44 = vcombine.high %v494_v39, %v504_v41  ;;  %v1016_v58 = vcombine.high %v991_v26, %v1007_v45  ;;  %v589_v48 = vrot.slane %v581_v46, %v3144_v18  ;;  %v605_v52 = vrot.slane %v597_v47, %v3144_v18 }
  0x72   : > { %v969_v59 = vsel %vm954_vm2, %v966_v4, %v968_v51  ;;  %v974_v60 = vsel %vm954_vm2, %v971_v12, %v973_v54  ;;  %v3280_v63 = vrot.slane %v582_v56, %v3144_v18  ;;  %vm719_vm3 = vcmask 1045504  }
  0x73   : > { %v1051_v61 = vcombine.low %v959_v42, %v969_v59  ;;  %v3283_v3 = vrot.slane %v598_v44, %v3144_v18  ;;  %v3286_v0 = vrot.slane %v1016_v58, %v3146_v24  ;;  %v614_v6 = vcombine.high %v589_v48, %v605_v52 }
  0x74   : > { %v1067_v7 = vcombine.low %v964_v53, %v974_v60  ;;  %v613_v11 = vcombine.low %v589_v48, %v605_v52  ;;  %v1052_v12 = vcombine.high %v959_v42, %v969_v59  ;;  %v1068_v14 = vcombine.high %v964_v53, %v974_v60 }
  0x75   : > { %v1059_v13 = vrot.slane %v1051_v61, %v3144_v18  ;;  %v629_v4 = vcombine.low %v3280_v63, %v3283_v3  ;;  %v2590_v15 = vpack.i.bf16 %v3286_v0, %v3261_v23  ;;  %v3294_v16 = vrot.slane %v614_v6, %v3146_v24 }
  0x76   : > { %v1075_v17 = vrot.slane %v1067_v7, %v3144_v18  ;;  %v3298_v20 = vrot.slane %v613_v11, %v3146_v24  ;;  %v3304_v22 = vrot.slane %v1052_v12, %v3144_v18  ;;  %v3307_v27 = vrot.slane %v1068_v14, %v3144_v18 }
  0x77   : > { %v3301_v21 = vrot.slane %v629_v4, %v3146_v24  ;;  %v545_v39 = vcombine.low %v3223_v1, %v3235_v8  ;;  %2591 = vrot.lane.b32.xlu0 %v2590_v15, %s2967_s23  ;;  %v1015_v43 = vcombine.low %v991_v26, %v1007_v45  ;;  %v263_v51 = vcombine.low %v3152_v28, %v3164_v32 }
  0x78   : > { %4563 = vst [vmem:[#allocation12_spill] sm:$0xff] %v3298_v20  ;;  %v1084_v40 = vcombine.high %v1059_v13, %v1075_v17  ;;  %v645_v41 = vcombine.high %v3298_v20, %v4522_v5  ;;  %v1083_v42 = vcombine.low %v1059_v13, %v1075_v17  ;;  %v1099_v46 = vcombine.low %v3304_v22, %v3307_v27 }
  0x79   : > { %v3317_v47 = vrot.slane %v545_v39, %v3146_v24  ;;  %v279_v1 = vcombine.low %v3161_v31, %v3170_v34  ;;  %v3328_v54 = vrot.slane %v1015_v43, %v3146_v24  ;;  %v721_v26 = vrot.slane %v3149_v25, 2 }
  0x7a   : > { %v1098_v8 = vrot.slane %v1084_v40, %v3146_v24  ;;  %v3325_v53 = vrot.slane %v1083_v42, %v3146_v24  ;;  %v3332_v45 = vrot.slane %v1099_v46, %v3146_v24  ;;  %v271_v44 = vrot.slane %v263_v51, %v3144_v18 }
  0x7b   : > { %4564 = vst [vmem:[#allocation13_spill] sm:$0xff] %v3317_v47  ;;  %4566 = vst [vmem:[#allocation15_spill] sm:$0xff] %v3328_v54  ;;  %v577_v56 = vcombine.high %v3317_v47, %v4522_v5  ;;  %v287_v58 = vrot.slane %v279_v1, %v3144_v18  ;;  %v1047_v59 = vcombine.high %v3328_v54, %v4522_v5  ;;  %v723_v60 = vrot.slane %v3173_v35, 2 }
  0x7c   : > { %4565 = vst [vmem:[#allocation14_spill] sm:$0xff] %v3325_v53  ;;  %v2585_v48 = vpack.i.bf16 %v1098_v8, %v3294_v16  ;;  %v1115_v52 = vcombine.high %v3325_v53, %v4522_v5  ;;  %v726_v6 = vrot.slane %v3155_v29, 2  ;;  %v728_v7 = vrot.slane %v3176_v36, 2 }
  0x7d   : > { %v296_v61 = vcombine.high %v271_v44, %v287_v58  ;;  %v2595_v13 = vpack.i.bf16 %v3332_v45, %v3301_v21  ;;  %v2615_v4 = vpack.i.bf16 %v1047_v59, %v577_v56  ;;  %v731_v12 = vrot.slane %v3158_v30, 2 }
  0x7e   : > { %2586 = vrot.lane.b32.xlu1 %v2585_v48, %s2967_s23  ;;  %v2610_v11 = vpack.i.bf16 %v1115_v52, %v645_v41  ;;  %v3351_v14 = vsel %vm719_vm3, %v721_v26, %v723_v60  ;;  %v3354_v15 = vsel %vm719_vm3, %v726_v6, %v728_v7  ;;  %v733_v17 = vrot.slane %v3179_v37, 2 }
  0x7f   : > { %v736_v39 = vrot.slane %v3167_v33, 2  ;;  %v738_v40 = vrot.slane %v3182_v38, 2  ;;  %v295_v41 = vcombine.low %v271_v44, %v287_v58  ;;  %v514_v42 = vcombine.high %v3197_v49, %v3205_v55 }
  0x80   : > { %2611 = vrot.lane.b32.xlu0 %v2610_v11, %s2969_s4  ;;  %v530_v43 = vcombine.high %v3200_v50, %v3209_v57  ;;  %v3365_v46 = vrot.slane %v296_v61, %v3146_v24  ;;  %v3368_v51 = vsel %vm719_vm3, %v731_v12, %v733_v17  ;;  %v984_v1 = vcombine.high %v3226_v2, %v3241_v10 }
  0x81   : > { %v1000_v56 = vcombine.high %v3238_v9, %v3254_v19  ;;  %vm1423_vm4 = vcmask 1042432   ;;  %v3376_v49 = vsel %vm719_vm3, %v736_v39, %v738_v40  ;;  %v816_v50 = vcombine.low %v3351_v14, %v3368_v51 }
  0x82   : > { %2596 = vrot.lane.b32.xlu1 %v2595_v13, %s2970_s7  ;;  %v3381_v55 = vrot.slane %v295_v41, %v3146_v24  ;;  %v3384_v57 = vrot.slane %v514_v42, %v3144_v18  ;;  %v832_v2 = vcombine.low %v3354_v15, %v3376_v49  ;;  %v3389_v9 = vrot.slane %v530_v43, %v3144_v18 }
  0x83   : > { %v3392_v10 = vrot.slane %v984_v1, %v3144_v18  ;;  %v3395_v19 = vrot.slane %v1000_v56, %v3144_v18  ;;  %v824_v44 = vrot.slane %v816_v50, %v3144_v18  ;;  %v3403_v48 = vcombine.high %v3261_v23, %v4522_v5 }
  0x84   : > { %4567 = vst [vmem:[#allocation16_spill] sm:$0xff] %v3381_v55  ;;  %2616 = vrot.lane.b32.xlu0 %v2615_v4, %s2969_s4  ;;  %v327_v58 = vcombine.high %v3381_v55, %v4522_v5  ;;  %v1048_v52 = vcombine.high %v3286_v0, %v4522_v5  ;;  %v840_v59 = vrot.slane %v832_v2, %v3144_v18  ;;  %v720_v23 = vrot.slane %v3152_v28, 2 }
  0x85   : > { %v561_v60 = vcombine.low %v3384_v57, %v3389_v9  ;;  %v1031_v61 = vcombine.low %v3392_v10, %v3395_v19  ;;  %v3414_v7 = vcombine.high %v3294_v16, %v4522_v5  ;;  %v3417_v11 = vcombine.high %v1098_v8, %v4522_v5 }
  0x86   : > { %v725_v13 = vrot.slane %v3161_v31, 2  ;;  %v730_v0 = vrot.slane %v3164_v32, 2  ;;  %v849_v4 = vcombine.high %v824_v44, %v840_v59  ;;  %v848_v17 = vcombine.low %v824_v44, %v840_v59 }
  0x87   : > { %v3423_v40 = vrot.slane %v561_v60, %v3146_v24  ;;  %v3426_v41 = vrot.slane %v1031_v61, %v3146_v24  ;;  %v2630_v16 = vpack.i.bf16 %v1048_v52, %v3403_v48  ;;  %v3430_v42 = vsel %vm719_vm3, %v720_v23, %v721_v26 }
  0x88   : > { %v3433_v8 = vsel %vm719_vm3, %v725_v13, %v726_v6  ;;  %v3436_v43 = vsel %vm719_vm3, %v730_v0, %v731_v12  ;;  %v3439_v1 = vrot.slane %v849_v4, %v3146_v24  ;;  %v3442_v56 = vrot.slane %v848_v17, %v3146_v24 }
  0x89   : > { %v2605_v50 = vpack.i.bf16 %v3426_v41, %v3423_v40  ;;  %v735_v2 = vrot.slane %v3170_v34, 2  ;;  %v748_v26 = vcombine.low %v3430_v42, %v3436_v43  ;;  %v1425_v6 = vrot.slane %v3149_v25, 5 }
  0x8a   : > { %4568 = vst [vmem:[#allocation17_spill] sm:$0xff] %v3442_v56  ;;  %v1427_v44 = vrot.slane %v3173_v35, 5  ;;  %v1430_v12 = vrot.slane %v3155_v29, 5  ;;  %v2600_v48 = vpack.i.bf16 %v3365_v46, %v3439_v1  ;;  %v880_v52 = vcombine.high %v3442_v56, %v4522_v5 }
  0x8b   : > { %v3457_v59 = vsel %vm719_vm3, %v735_v2, %v736_v39  ;;  %v1432_v60 = vrot.slane %v3176_v36, 5  ;;  %vm1893_vm5 = vcmask 1040384   ;;  %v756_v61 = vrot.slane %v748_v26, %v3144_v18 }
  0x8c   : > { %v764_v23 = vcombine.low %v3433_v8, %v3457_v59  ;;  %v3464_v13 = vsel %vm1423_vm4, %v1425_v6, %v1427_v44  ;;  %v1435_v0 = vrot.slane %v3158_v30, 5  ;;  %2601 = vrot.lane.b32.xlu1 %v2600_v48, %s2967_s23  ;;  %v2625_v4 = vpack.i.bf16 %v327_v58, %v880_v52 }
  0x8d   : > { %v3469_v17 = vsel %vm1423_vm4, %v1430_v12, %v1432_v60  ;;  %v1437_v39 = vrot.slane %v3179_v37, 5  ;;  %v1440_v2 = vrot.slane %v3167_v33, 5  ;;  %v1442_v5 = vrot.slane %v3182_v38, 5 }
  0x8e   : > { %v772_v26 = vrot.slane %v764_v23, %v3144_v18  ;;  %v4569_v56 = vmov 0.0   ;;  %2626 = vrot.lane.b32.xlu0 %v2625_v4, %s2969_s4  ;;  %v1424_v48 = vrot.slane %v3152_v28, 5  ;;  %v1429_v52 = vrot.slane %v3161_v31, 5 }
  0x8f   : > { %v3477_v44 = vcombine.high %v3301_v21, %v4569_v56  ;;  %v3481_v20 = vcombine.high %v3332_v45, %v4569_v56  ;;  %v3485_v58 = vsel %vm1423_vm4, %v1435_v0, %v1437_v39  ;;  %v1434_v60 = vrot.slane %v3164_v32, 5 }
  0x90   : > { %v780_v23 = vcombine.low %v756_v61, %v772_v26  ;;  %v3491_v53 = vsel %vm1423_vm4, %v1440_v2, %v1442_v5  ;;  %v1520_v21 = vcombine.low %v3464_v13, %v3485_v58  ;;  %v781_v45 = vcombine.high %v756_v61, %v772_v26  ;;  %2606 = vrot.lane.b32.xlu1 %v2605_v50, %s2970_s7 }
  0x91   : > { %v2620_v4 = vpack.i.bf16 %v3417_v11, %v3414_v7  ;;  %v1536_v39 = vcombine.low %v3469_v17, %v3491_v53  ;;  %v3503_v47 = vsel %vm1423_vm4, %v1424_v48, %v1425_v6  ;;  %v3510_v61 = vsel %vm1423_vm4, %v1429_v52, %v1430_v12 }
  0x92   : > { %v3506_v5 = vrot.slane %v780_v23, %v3146_v24  ;;  %v1528_v54 = vrot.slane %v1520_v21, %v3144_v18  ;;  %4571 = vst [vmem:[#allocation19_spill] sm:$0xff] %v3510_v61  ;;  %v3513_v50 = vsel %vm1423_vm4, %v1434_v60, %v1435_v0  ;;  %2631 = vrot.lane.b32.xlu0 %v2630_v16, %s2968_s26  ;;  %v1439_v11 = vrot.slane %v3170_v34, 5 }
  0x93   : > { %v1544_v7 = vrot.slane %v1536_v39, %v3144_v18  ;;  %v1452_v6 = vcombine.low %v3503_v47, %v3513_v50  ;;  %v4531_v26 = vrot.slane %v3149_v25, 7  ;;  %v795_v48 = vrot.slane %v781_v45, %v3146_v24 }
  0x94   : > { %4570 = vst [vmem:[#allocation18_spill] sm:$0xff] %v3506_v5  ;;  %v1897_v23 = vrot.slane %v3173_v35, 7  ;;  %v1902_v0 = vrot.slane %v3176_v36, 7  ;;  %2621 = vrot.lane.b32.xlu1 %v2620_v4, %s2968_s26  ;;  %v812_v16 = vcombine.high %v3506_v5, %v4569_v56  ;;  %v3529_v21 = vsel %vm1423_vm4, %v1439_v11, %v1440_v2 }
  0x95   : > { %v1552_v52 = vcombine.low %v1528_v54, %v1544_v7  ;;  %v1553_v60 = vcombine.high %v1528_v54, %v1544_v7  ;;  %v3532_v39 = vrot.slane %v1452_v6, %v3144_v18  ;;  %v1468_v45 = vcombine.low %v3510_v61, %v3529_v21 }
  0x96   : > { %v3539_v55 = vsel %vm1893_vm5, %v4531_v26, %v1897_v23  ;;  %v4534_v4 = vrot.slane %v3158_v30, 7  ;;  %v1907_v2 = vrot.slane %v3179_v37, 7  ;;  %v4574_v6 = vrot.slane %v3155_v29, 7 }
  0x97   : > { %4572 = vst [vmem:[#allocation20_spill] sm:$0xff] %v3539_v55  ;;  %v3543_v12 = vrot.slane %v1552_v52, %v3146_v24  ;;  %v1567_v54 = vrot.slane %v1553_v60, %v3146_v24  ;;  %v3549_v11 = vrot.slane %v1468_v45, %v3144_v18  ;;  %v1912_v23 = vrot.slane %v3182_v38, 7 }
  0x98   : > { %v3554_v5 = vsel %vm1893_vm5, %v4574_v6, %v1902_v0  ;;  %v328_v52 = vcombine.high %v3365_v46, %v4569_v56  ;;  %v3564_v7 = vsel %vm1893_vm5, %v4534_v4, %v1907_v2  ;;  %v881_v45 = vcombine.high %v3439_v1, %v4569_v56 }
  0x99   : > { %4573 = vst [vmem:[#allocation21_spill] sm:$0xff] %v3543_v12  ;;  %4575 = vst [vmem:[#allocation22_spill] sm:$0xff] %v3554_v5  ;;  %v1584_v60 = vcombine.high %v3543_v12, %v4569_v56  ;;  %v2645_v26 = vpack.i.bf16 %v1567_v54, %v795_v48  ;;  %v1484_v0 = vcombine.low %v3532_v39, %v3549_v11  ;;  %v4577_v6 = vrot.slane %v3167_v33, 7 }
  0x9a   : > { %4576 = vst [vmem:[#allocation23_spill] sm:$0xff] %v3564_v7  ;;  %v1990_v46 = vcombine.low %v3539_v55, %v3564_v7  ;;  %v3579_v12 = vcombine.high %v3423_v40, %v4569_v56  ;;  %v3586_v4 = vcombine.high %v3426_v41, %v4569_v56  ;;  %v348_v40 = vcombine.high %v3155_v29, %v3167_v33 }
  0x9b   : > { %v3573_v62 = vsel %vm1893_vm5, %v4577_v6, %v1912_v23  ;;  %v2635_v2 = vpack.i.bf16 %v1584_v60, %v812_v16  ;;  %2646 = vrot.lane.b32.xlu1 %v2645_v26, %s2967_s23  ;;  %v332_v23 = vcombine.high %v3149_v25, %v3158_v30  ;;  %v3591_v6 = vrot.slane %v1484_v0, %v3146_v24 }
  0x9c   : > { %4578 = vst [vmem:[#allocation24_spill] sm:$0xff] %v3573_v62  ;;  %v2006_v1 = vcombine.low %v3554_v5, %v3573_v62  ;;  %v3594_v55 = vrot.slane %v1990_v46, %v3144_v18  ;;  %v3599_v26 = vcombine.high %v795_v48, %v4569_v56  ;;  %v2650_v16 = vpack.i.bf16 %v328_v52, %v881_v45 }
  0x9d   : > { %4579 = vst [vmem:[#allocation25_spill] sm:$0xff] %v3591_v6  ;;  %2636 = vrot.lane.b32.xlu0 %v2635_v2, %s2969_s4  ;;  %v3606_v60 = vrot.slane %v332_v23, %v3144_v18  ;;  %v3609_v0 = vcombine.high %v1567_v54, %v4569_v56  ;;  %v2660_v46 = vpack.i.bf16 %v3586_v4, %v3579_v12  ;;  %v4541_v54 = vrot.slane %v3158_v30, 4 }
  0x9e   : > { %v3603_v41 = vrot.slane %v2006_v1, %v3144_v18  ;;  %v3614_v5 = vrot.slane %v348_v40, %v3144_v18  ;;  %v630_v48 = vcombine.high %v3280_v63, %v3283_v3  ;;  %v1100_v2 = vcombine.high %v3304_v22, %v3307_v27 }
  0x9f   : > { %v1516_v52 = vcombine.high %v3591_v6, %v4569_v56  ;;  %v1192_v1 = vrot.slane %v3173_v35, 4  ;;  %v4580_v22 = vpack.i.bf16 %v3481_v20, %v3477_v44  ;;  %v1197_v40 = vrot.slane %v3176_v36, 4 }
  0xa0   : > { %v2022_v45 = vcombine.low %v3594_v55, %v3603_v41  ;;  %v379_v12 = vcombine.low %v3606_v60, %v3614_v5  ;;  %v644_v63 = vrot.slane %v630_v48, %v3146_v24  ;;  %v1114_v23 = vrot.slane %v1100_v2, %v3146_v24 }
  0xa1   : > { %2641 = vrot.lane.b32.xlu0 %v4580_v22, %s2971_s10  ;;  %v4582_v48 = vrot.slane %v3149_v25, 4  ;;  %v1202_v6 = vrot.slane %v3179_v37, 4  ;;  %v4584_v2 = vrot.slane %v3155_v29, 4  ;;  %v1207_v22 = vrot.slane %v3182_v38, 4 }
  0xa2   : > { %v3637_v27 = vrot.slane %v2022_v45, %v3146_v24  ;;  %v387_v4 = vrot.slane %v379_v12, %v3146_v24  ;;  %v1894_v12 = vrot.slane %v3152_v28, 7  ;;  %v1904_v20 = vrot.slane %v3164_v32, 7 }
  0xa3   : > { %v3646_v3 = vsel %vm230_vm0, %v4582_v48, %v1192_v1  ;;  %v3655_v45 = vsel %vm230_vm0, %v4584_v2, %v1197_v40  ;;  %v3662_v1 = vsel %vm230_vm0, %v4541_v54, %v1202_v6  ;;  %v1899_v48 = vrot.slane %v3161_v31, 7 }
  0xa4   : > { %4581 = vst [vmem:[#allocation26_spill] sm:$0xff] %v3637_v27  ;;  %4583 = vst [vmem:[#allocation27_spill] sm:$0xff] %v3646_v3  ;;  %v2054_v44 = vcombine.high %v3637_v27, %v4569_v56  ;;  %v1909_v27 = vrot.slane %v3170_v34, 7  ;;  %v4585_v40 = vrot.slane %v3167_v33, 4  ;;  %v1285_v7 = vcombine.low %v3646_v3, %v3662_v1 }
  0xa5   : > { %2651 = vrot.lane.b32.xlu0 %v2650_v16, %s2968_s26  ;;  %v4586_v6 = vrot.slane %v3149_v25, 7  ;;  %vm1658_vm6 = vcmask 1041408   ;;  %vm455_vm7 = vcmask 130048   ;;  %vm457_vm8 = vcmask 261120  }
  0xa6   : > { %v2655_v62 = vpack.i.bf16 %v1516_v52, %v2054_v44  ;;  %v3671_v2 = vsel %vm230_vm0, %v4585_v40, %v1207_v22  ;;  %v4588_v52 = vrot.slane %v3155_v29, 7  ;;  %v4590_v44 = vrot.slane %v3158_v30, 7 }
  0xa7   : > { %v3678_v54 = vsel %vm1893_vm5, %v1894_v12, %v4586_v6  ;;  %v1301_v61 = vcombine.low %v3655_v45, %v3671_v2  ;;  %v4591_v40 = vrot.slane %v3167_v33, 7  ;;  %v3699_v12 = vrot.slane %v1285_v7, %v3144_v18 }
  0xa8   : > { %4587 = vst [vmem:[#allocation28_spill] sm:$0xff] %v3678_v54  ;;  %v3685_v16 = vsel %vm1893_vm5, %v1899_v48, %v4588_v52  ;;  %v3690_v22 = vsel %vm1893_vm5, %v1904_v20, %v4590_v44  ;;  %2656 = vrot.lane.b32.xlu1 %v2655_v62, %s2969_s4  ;;  %v264_v20 = vcombine.high %v3152_v28, %v3164_v32  ;;  %vm459_vm9 = vcmask 392192  }
  0xa9   : > { %4589 = vst [vmem:[#allocation29_spill] sm:$0xff] %v3685_v16  ;;  %v3695_v3 = vsel %vm1893_vm5, %v1909_v27, %v4591_v40  ;;  %v1922_v6 = vcombine.low %v3678_v54, %v3690_v22  ;;  %v1309_v52 = vrot.slane %v1301_v61, %v3144_v18  ;;  %v280_v27 = vcombine.high %v3161_v31, %v3170_v34 }
  0xaa   : > { %4592 = vst [vmem:[#allocation30_spill] sm:$0xff] %v3695_v3  ;;  %v1938_v48 = vcombine.low %v3685_v16, %v3695_v3  ;;  %v817_v62 = vcombine.high %v3351_v14, %v3368_v51  ;;  %v833_v7 = vcombine.high %v3354_v15, %v3376_v49  ;;  %440 = vrot.lane.b32.xlu0 %v387_v4, %s2970_s7  ;;  %vm461_vm10 = vcmask 523264  }
  0xab   : > { %v2665_v44 = vpack.i.bf16 %v1114_v23, %v644_v63  ;;  %v3716_v40 = vrot.slane %v1922_v6, %v3144_v18  ;;  %v3722_v61 = vrot.slane %v264_v20, %v3144_v18  ;;  %v1317_v3 = vcombine.low %v3699_v12, %v1309_v52 }
  0xac   : > { %v3719_v16 = vrot.slane %v1938_v48, %v3144_v18  ;;  %v3726_v54 = vrot.slane %v280_v27, %v3144_v18  ;;  %v3729_v14 = vrot.slane %v817_v62, %v3144_v18  ;;  %v3732_v15 = vrot.slane %v833_v7, %v3144_v18  ;;  %2661 = vrot.lane.b32.xlu1 %v2660_v46, %s2971_s10 }
  0xad   : > { %v1485_v49 = vcombine.high %v3532_v39, %v3549_v11  ;;  %v2023_v6 = vcombine.high %v3594_v55, %v3603_v41  ;;  %v3742_v48 = vcombine.high %v644_v63, %v4569_v56  ;;  %v3745_v20 = vrot.slane %v1317_v3, %v3146_v24 }
  0xae   : > { %v1954_v51 = vcombine.low %v3716_v40, %v3719_v16  ;;  %v311_v27 = vcombine.low %v3722_v61, %v3726_v54  ;;  %v864_v46 = vcombine.low %v3729_v14, %v3732_v15  ;;  %v3752_v62 = vcombine.high %v1114_v23, %v4569_v56  ;;  %2666 = vrot.lane.b32.xlu0 %v2665_v44, %s2972_s29 }
  0xaf   : > { %4593 = vst [vmem:[#allocation31_spill] sm:$0xff] %v3745_v20  ;;  %v397_v39 = vcombine.high %v387_v4, %v4569_v56  ;;  %v3760_v11 = vrot.slane %v1485_v49, %v3146_v24  ;;  %v562_v41 = vcombine.high %v3384_v57, %v3389_v9  ;;  %v1349_v63 = vcombine.high %v3745_v20, %v4569_v56 }
  0xb0   : > { %v3756_v55 = vrot.slane %v1954_v51, %v3146_v24  ;;  %v319_v3 = vrot.slane %v311_v27, %v3146_v24  ;;  %v872_v23 = vrot.slane %v864_v46, %v3146_v24  ;;  %v3769_v7 = vrot.slane %v2023_v6, %v3146_v24 }
  0xb1   : > { %v4595_v4 = vpack.i.bf16 %v3609_v0, %v3599_v26  ;;  %v2695_v57 = vpack.i.bf16 %v3752_v62, %v3742_v48  ;;  %v3780_v9 = vrot.slane %v562_v41, %v3146_v24  ;;  %v1032_v51 = vcombine.high %v3392_v10, %v3395_v19 }
  0xb2   : > { %4594 = vst [vmem:[#allocation32_spill] sm:$0xff] %v3756_v55  ;;  %v1986_v44 = vcombine.high %v3756_v55, %v4569_v56  ;;  %v2675_v49 = vpack.i.bf16 %v319_v3, %v872_v23  ;;  %v329_v6 = vcombine.high %v319_v3, %v4569_v56  ;;  %v882_v27 = vcombine.high %v872_v23, %v4569_v56 }
  0xb3   : > { %2671 = vrot.lane.b32.xlu1 %v4595_v4, %s2968_s26  ;;  %v749_v26 = vcombine.high %v3430_v42, %v3436_v43  ;;  %v3789_v46 = vrot.slane %v1032_v51, %v3146_v24  ;;  %v765_v48 = vcombine.high %v3433_v8, %v3457_v59  ;;  %v1521_v62 = vcombine.high %v3464_v13, %v3485_v58 }
  0xb4   : > { %v2680_v0 = vpack.i.bf16 %v1349_v63, %v1986_v44  ;;  %2676 = vrot.lane.b32.xlu0 %v2675_v49, %s2970_s7  ;;  %v2685_v10 = vpack.i.bf16 %v3760_v11, %v3769_v7  ;;  %v1537_v42 = vcombine.high %v3469_v17, %v3491_v53  ;;  %v1318_v43 = vcombine.high %v3699_v12, %v1309_v52 }
  0xb5   : > { %v3799_v19 = vrot.slane %v749_v26, %v3144_v18  ;;  %v2705_v41 = vpack.i.bf16 %v329_v6, %v882_v27  ;;  %v3806_v8 = vrot.slane %v765_v48, %v3144_v18  ;;  %v3809_v59 = vrot.slane %v1521_v62, %v3144_v18 }
  0xb6   : > { %v1955_v13 = vcombine.high %v3716_v40, %v3719_v16  ;;  %v2690_v58 = vpack.i.bf16 %v3789_v46, %v3780_v9  ;;  %v3816_v63 = vrot.slane %v1537_v42, %v3144_v18  ;;  %v1189_v53 = vrot.slane %v3152_v28, 4 }
  0xb7   : > { %2681 = vrot.lane.b32.xlu1 %v2680_v0, %s2969_s4  ;;  %v1194_v17 = vrot.slane %v3161_v31, 4  ;;  %v796_v12 = vcombine.low %v3799_v19, %v3806_v8  ;;  %v3823_v52 = vrot.slane %v1318_v43, %v3146_v24  ;;  %v1199_v3 = vrot.slane %v3164_v32, 4 }
  0xb8   : > { %v1204_v16 = vrot.slane %v3170_v34, 4  ;;  %2686 = vrot.lane.b32.xlu0 %v2685_v10, %s2967_s23  ;;  %v1568_v40 = vcombine.low %v3809_v59, %v3816_v63  ;;  %v4596_v23 = vrot.slane %v3149_v25, 4  ;;  %v4597_v44 = vrot.slane %v3155_v29, 4 }
  0xb9   : > { %v1660_v49 = vrot.slane %v3149_v25, 6  ;;  %v804_v6 = vrot.slane %v796_v12, %v3146_v24  ;;  %v3844_v27 = vrot.slane %v1955_v13, %v3146_v24  ;;  %v4598_v26 = vrot.slane %v3158_v30, 4 }
  0xba   : > { %v3833_v4 = vsel %vm230_vm0, %v1189_v53, %v4596_v23  ;;  %v3838_v51 = vsel %vm230_vm0, %v1194_v17, %v4597_v44  ;;  %v4599_v48 = vrot.slane %v3167_v33, 4  ;;  %v1576_v10 = vrot.slane %v1568_v40, %v3146_v24 }
  0xbb   : > { %444 = vrot.lane.b32.xlu1 %v397_v39, %s2971_s10  ;;  %v3849_v0 = vsel %vm230_vm0, %v1199_v3, %v4598_v26  ;;  %v1662_v42 = vrot.slane %v3173_v35, 6  ;;  %v1665_v43 = vrot.slane %v3155_v29, 6  ;;  %v1667_v13 = vrot.slane %v3176_v36, 6 }
  0xbc   : > { %v3854_v62 = vsel %vm230_vm0, %v1204_v16, %v4599_v48  ;;  %v1217_v25 = vcombine.low %v3833_v4, %v3849_v0  ;;  %v1670_v53 = vrot.slane %v3158_v30, 6  ;;  %v1672_v17 = vrot.slane %v3179_v37, 6  ;;  %2691 = vrot.lane.b32.xlu0 %v2690_v58, %s2972_s29 }
  0xbd   : > { %v1233_v39 = vcombine.low %v3838_v51, %v3854_v62  ;;  %v2700_v12 = vpack.i.bf16 %v1576_v10, %v804_v6  ;;  %v3874_v40 = vsel %vm1658_vm6, %v1660_v49, %v1662_v42  ;;  %v3878_v29 = vsel %vm1658_vm6, %v1665_v43, %v1667_v13 }
  0xbe   : > { %v3868_v3 = vrot.slane %v1217_v25, %v3144_v18  ;;  %v3881_v30 = vsel %vm1658_vm6, %v1670_v53, %v1672_v17  ;;  %v1675_v58 = vrot.slane %v3167_v33, 6  ;;  %v1677_v23 = vrot.slane %v3182_v38, 6 }
  0xbf   : > { %v3871_v16 = vrot.slane %v1233_v39, %v3144_v18  ;;  %2696 = vrot.lane.b32.xlu1 %v2695_v57, %s2973_s19  ;;  %v1755_v26 = vcombine.low %v3874_v40, %v3881_v30  ;;  %v2715_v33 = vpack.i.bf16 %v3823_v52, %v3844_v27  ;;  %v380_v39 = vcombine.high %v3606_v60, %v3614_v5 }
  0xc0   : > { %v3890_v48 = vsel %vm1658_vm6, %v1675_v58, %v1677_v23  ;;  %2701 = vrot.lane.b32.xlu0 %v2700_v12, %s2970_s7  ;;  %v1659_v17 = vrot.slane %v3152_v28, 6  ;;  %v1664_v12 = vrot.slane %v3161_v31, 6  ;;  %v1669_v23 = vrot.slane %v3164_v32, 6 }
  0xc1   : > { %v1249_v44 = vcombine.low %v3868_v3, %v3871_v16  ;;  %v1763_v57 = vrot.slane %v1755_v26, %v3144_v18  ;;  %v1771_v25 = vcombine.low %v3878_v29, %v3890_v48  ;;  %v1674_v26 = vrot.slane %v3170_v34, 6 }
  0xc2   : > { %v814_v55 = vcombine.high %v804_v6, %v4569_v56  ;;  %v3911_v20 = vsel %vm1658_vm6, %v1659_v17, %v1660_v49  ;;  %v3914_v5 = vsel %vm1658_vm6, %v1664_v12, %v1665_v43  ;;  %v394_v60 = vrot.slane %v380_v39, %v3146_v24 }
  0xc3   : > { %2706 = vrot.lane.b32.xlu1 %v2705_v41, %s2971_s10  ;;  %v3902_v42 = vrot.slane %v1249_v44, %v3146_v24  ;;  %v1779_v13 = vrot.slane %v1771_v25, %v3144_v18  ;;  %v1586_v28 = vcombine.high %v1576_v10, %v4569_v56  ;;  %v3920_v31 = vsel %vm1658_vm6, %v1669_v23, %v1670_v53 }
  0xc4   : > { %v3923_v32 = vsel %vm1658_vm6, %v1674_v26, %v1675_v58  ;;  %v1687_v6 = vcombine.low %v3911_v20, %v3920_v31  ;;  %v1517_v10 = vcombine.high %v3760_v11, %v4569_v56  ;;  %v2055_v53 = vcombine.high %v3769_v7, %v4569_v56 }
  0xc5   : > { %v1787_v41 = vcombine.low %v1763_v57, %v1779_v13  ;;  %v1281_v34 = vcombine.high %v3902_v42, %v4569_v56  ;;  %v1703_v43 = vcombine.low %v3914_v5, %v3923_v32  ;;  %v580_v17 = vcombine.high %v3780_v9, %v4569_v56 }
  0xc6   : > { %v3941_v44 = vrot.slane %v1687_v6, %v3144_v18  ;;  %v1050_v11 = vcombine.high %v3789_v46, %v4569_v56  ;;  %v2720_v12 = vpack.i.bf16 %v1517_v10, %v2055_v53  ;;  %v312_v23 = vcombine.high %v3722_v61, %v3726_v54  ;;  %v4600_v46 = vld [vmem:[#allocation19_spill] sm:$0xff]  ;;  %v4604_v10 = vld [vmem:[#allocation22_spill] sm:$0xff] }
  0xc7   : > { %2716 = vrot.lane.b32.xlu1 %v2715_v33, %s2967_s23  ;;  %v3928_v49 = vrot.slane %v1787_v41, %v3146_v24  ;;  %v3944_v25 = vrot.slane %v1703_v43, %v3144_v18  ;;  %v2730_v33 = vpack.i.bf16 %v1586_v28, %v814_v55  ;;  %v865_v26 = vcombine.high %v3729_v14, %v3732_v15  ;;  %v4601_v28 = vld [vmem:[#allocation23_spill] sm:$0xff]  ;;  %v4603_v43 = vld [vmem:[#allocation24_spill] sm:$0xff] }
  0xc8   : > { %v1453_v55 = vcombine.high %v3503_v47, %v3513_v50  ;;  %v1469_v41 = vcombine.high %v4600_v46, %v3529_v21  ;;  %v2007_v54 = vcombine.high %v4604_v10, %v4603_v43  ;;  %v1350_v61 = vcombine.high %v3823_v52, %v4569_v56  ;;  %v4608_v43 = vld [vmem:[#allocation29_spill] sm:$0xff] }
  0xc9   : > { %v1819_v58 = vcombine.high %v3928_v49, %v4569_v56  ;;  %v1719_v7 = vcombine.low %v3941_v44, %v3944_v25  ;;  %v1987_v47 = vcombine.high %v3844_v27, %v4569_v56  ;;  %v2725_v50 = vpack.i.bf16 %v1050_v11, %v580_v17 }
  0xca   : > { %v326_v21 = vrot.slane %v312_v23, %v3146_v24  ;;  %v879_v15 = vrot.slane %v865_v26, %v3146_v24  ;;  %v1250_v53 = vcombine.high %v3868_v3, %v3871_v16  ;;  %v3985_v52 = vrot.slane %v1469_v41, %v3144_v18  ;;  %v4605_v26 = vld [vmem:[#allocation27_spill] sm:$0xff] }
  0xcb   : > { %448 = vrot.lane.b32.xlu1 %v394_v60, %s2972_s29  ;;  %v2710_v39 = vpack.i.bf16 %v1281_v34, %v1819_v58  ;;  %v3961_v9 = vrot.slane %v1719_v7, %v3146_v24  ;;  %v4602_v34 = vld [vmem:[#allocation20_spill] sm:$0xff]  ;;  %v1788_v58 = vcombine.high %v1763_v57, %v1779_v13  ;;  %v2745_v17 = vpack.i.bf16 %v1350_v61, %v1987_v47 }
  0xcc   : > { %v1991_v6 = vcombine.high %v4602_v34, %v4601_v28  ;;  %v1264_v3 = vrot.slane %v1250_v53, %v3146_v24  ;;  %v2735_v57 = vpack.i.bf16 %v326_v21, %v879_v15  ;;  %v398_v7 = vcombine.high %v394_v60, %v4569_v56  ;;  %v4606_v28 = vld [vmem:[#allocation28_spill] sm:$0xff] }
  0xcd   : > { %2711 = vrot.lane.b32.xlu0 %v2710_v39, %s2969_s4  ;;  %v1751_v14 = vcombine.high %v3961_v9, %v4569_v56  ;;  %v3991_v39 = vrot.slane %v2007_v54, %v3144_v18  ;;  %v1802_v16 = vrot.slane %v1788_v58, %v3146_v24  ;;  %v883_v23 = vcombine.high %v879_v15, %v4569_v56 }
  0xce   : > { %v3988_v27 = vrot.slane %v1991_v6, %v3144_v18  ;;  %v1302_v46 = vcombine.high %v3655_v45, %v3671_v2  ;;  %v1923_v34 = vcombine.high %v4606_v28, %v3690_v22  ;;  %v4607_v6 = vld [vmem:[#allocation30_spill] sm:$0xff]  ;;  %v797_v61 = vcombine.high %v3799_v19, %v3806_v8 }
  0xcf   : > { %2731 = vrot.lane.b32.xlu1 %v2730_v33, %s2971_s10  ;;  %v3982_v33 = vrot.slane %v1453_v55, %v3144_v18  ;;  %v1286_v55 = vcombine.high %v4605_v26, %v3662_v1  ;;  %v2740_v41 = vpack.i.bf16 %v1264_v3, %v1802_v16  ;;  %v1939_v10 = vcombine.high %v4608_v43, %v4607_v6 }
  0xd0   : > { %v2038_v11 = vcombine.low %v3988_v27, %v3991_v39  ;;  %v1569_v1 = vcombine.high %v3809_v59, %v3816_v63  ;;  %v1282_v2 = vcombine.high %v1264_v3, %v4569_v56  ;;  %v1820_v22 = vcombine.high %v1802_v16, %v4569_v56 }
  0xd1   : > { %2721 = vrot.lane.b32.xlu0 %v2720_v12, %s2968_s26  ;;  %v1500_v13 = vcombine.low %v3982_v33, %v3985_v52  ;;  %v330_v12 = vcombine.high %v326_v21, %v4569_v56  ;;  %v4024_v47 = vrot.slane %v1286_v55, %v3144_v18  ;;  %v4033_v19 = vrot.slane %v1939_v10, %v3144_v18 }
  0xd2   : > { %v2046_v54 = vrot.slane %v2038_v11, %v3146_v24  ;;  %v811_v59 = vrot.slane %v797_v61, %v3146_v24  ;;  %v1583_v63 = vrot.slane %v1569_v1, %v3146_v24  ;;  %v1720_v21 = vcombine.high %v3941_v44, %v3944_v25 }
  0xd3   : > { %1824 = vrot.lane.b32.xlu1 %v1751_v14, %s2969_s4  ;;  %v1508_v60 = vrot.slane %v1500_v13, %v3146_v24  ;;  %v2760_v45 = vpack.i.bf16 %v330_v12, %v883_v23  ;;  %v4030_v14 = vrot.slane %v1923_v34, %v3144_v18  ;;  %v2765_v15 = vpack.i.bf16 %v1282_v2, %v1820_v22 }
  0xd4   : > { %v2056_v58 = vcombine.high %v2046_v54, %v4569_v56  ;;  %v1234_v44 = vcombine.high %v3838_v51, %v3854_v62  ;;  %v2755_v25 = vpack.i.bf16 %v1583_v63, %v811_v59  ;;  %v1734_v13 = vrot.slane %v1720_v21, %v3146_v24 }
  0xd5   : > { %2726 = vrot.lane.b32.xlu0 %v2725_v50, %s2973_s19  ;;  %v4027_v50 = vrot.slane %v1302_v46, %v3144_v18  ;;  %v2750_v8 = vpack.i.bf16 %v1508_v60, %v2046_v54  ;;  %v1518_v53 = vcombine.high %v1508_v60, %v4569_v56  ;;  %v1970_v16 = vcombine.low %v4030_v14, %v4033_v19 }
  0xd6   : > { %v1756_v11 = vcombine.high %v3874_v40, %v3881_v30  ;;  %v1704_v51 = vcombine.high %v3914_v5, %v3923_v32  ;;  %v1752_v62 = vcombine.high %v1734_v13, %v4569_v56  ;;  %v1248_v30 = vrot.slane %v1234_v44, %v3144_v18 }
  0xd7   : > { %2746 = vrot.lane.b32.xlu1 %v2745_v17, %s2968_s26  ;;  %v1333_v17 = vcombine.low %v4024_v47, %v4027_v50  ;;  %v2775_v12 = vpack.i.bf16 %v1518_v53, %v2056_v58  ;;  %v1978_v40 = vrot.slane %v1970_v16, %v3146_v24  ;;  %v815_v34 = vcombine.high %v811_v59, %v4569_v56 }
  0xd8   : > { %v1770_v5 = vrot.slane %v1756_v11, %v3144_v18  ;;  %v1587_v10 = vcombine.high %v1583_v63, %v4569_v56  ;;  %v1971_v2 = vcombine.high %v4030_v14, %v4033_v19  ;;  %v1501_v22 = vcombine.high %v3982_v33, %v3985_v52 }
  0xd9   : > { %2736 = vrot.lane.b32.xlu0 %v2735_v57, %s2972_s29  ;;  %v1218_v57 = vcombine.high %v3833_v4, %v3849_v0  ;;  %v1688_v4 = vcombine.high %v3911_v20, %v3920_v31  ;;  %v1341_v0 = vrot.slane %v1333_v17, %v3146_v24  ;;  %v1988_v55 = vcombine.high %v1978_v40, %v4569_v56 }
  0xda   : > { %v2780_v59 = vpack.i.bf16 %v1587_v10, %v815_v34  ;;  %v1985_v14 = vrot.slane %v1971_v2, %v3146_v24  ;;  %v1515_v33 = vrot.slane %v1501_v22, %v3146_v24  ;;  %v2128_v58 = vcombine.low %v3173_v35, %v3179_v37  ;;  %v4610_v10 = vld [vmem:[#allocation15_spill] sm:$0xff] }
  0xdb   : > { %452 = vrot.lane.b32.xlu1 %v398_v7, %s2973_s19  ;;  %v1772_v7 = vcombine.high %v3878_v29, %v3890_v48  ;;  %v1232_v29 = vrot.slane %v1218_v57, %v3144_v18  ;;  %v4609_v48 = vld [vmem:[#allocation11_spill] sm:$0xff]  ;;  %v1351_v20 = vcombine.high %v1341_v0, %v4569_v56  ;;  %v4077_v46 = vrot.slane %v1688_v4, %v3144_v18 }
  0xdc   : > { %v433_v3 = vpop.permute.xlu1 %432  ;;  %v2770_v43 = vpack.i.bf16 %v1341_v0, %v1978_v40  ;;  %v2144_v17 = vcombine.low %v3176_v36, %v3182_v38  ;;  %vm463_vm11 = vcmask 654336   ;;  %vm465_vm12 = vcmask 785408  }
  0xdd   : > { %2741 = vrot.lane.b32.xlu0 %v2740_v41, %s2967_s23  ;;  %v1786_v31 = vrot.slane %v1772_v7, %v3144_v18  ;;  %v4080_v41 = vrot.slane %v1704_v51, %v3144_v18  ;;  %v1265_v60 = vcombine.low %v1232_v29, %v1248_v30  ;;  %v2790_v61 = vpack.i.bf16 %v1351_v20, %v1988_v55 }
  0xde   : > { %v437_v28 = vpop.permute.xlu0 %436  ;;  %v2136_v51 = vrot.slane %v2128_v58, %v3144_v18  ;;  %v2152_v0 = vrot.slane %v2144_v17, %v3144_v18  ;;  %v2129_v20 = vcombine.high %v3173_v35, %v3179_v37  ;;  %v2145_v55 = vcombine.high %v3176_v36, %v3182_v38  ;;  %v4612_v17 = vld [vmem:[#allocation16_spill] sm:$0xff] }
  0xdf   : > { %2761 = vrot.lane.b32.xlu1 %v2760_v45, %s2973_s19  ;;  %v1803_v54 = vcombine.low %v1770_v5, %v1786_v31  ;;  %v1735_v1 = vcombine.low %v4077_v46, %v4080_v41  ;;  %v1334_v45 = vcombine.high %v4024_v47, %v4027_v50  ;;  %v1273_v63 = vrot.slane %v1265_v60, %v3146_v24 }
  0xe0   : > { %v429_v23 = vpop.permute.xlu1 %428  ;;  %v2161_v38 = vcombine.high %v2136_v51, %v2152_v0  ;;  %v2143_v2 = vrot.slane %v2129_v20, %v3144_v18  ;;  %v2159_v22 = vrot.slane %v2145_v55, %v3144_v18  ;;  %vm467_vm13 = vcmask 916480  }
  0xe1   : > { %2751 = vrot.lane.b32.xlu0 %v2750_v8, %s2970_s7  ;;  %v469_v26 = vsel %vm455_vm7, %v4609_v48, %v429_v23  ;;  %v2039_v8 = vcombine.high %v3988_v27, %v3991_v39  ;;  %v1811_v21 = vrot.slane %v1803_v54, %v3146_v24  ;;  %v1743_v47 = vrot.slane %v1735_v1, %v3146_v24  ;;  %v4611_v54 = vld [vmem:[#allocation13_spill] sm:$0xff] }
  0xe2   : > { %v470_v32 = vsel %vm457_vm8, %v469_v26, %v433_v3  ;;  %v1348_v50 = vrot.slane %v1334_v45, %v3146_v24  ;;  %v1266_v39 = vcombine.high %v1232_v29, %v1248_v30  ;;  %v1283_v16 = vcombine.high %v1273_v63, %v4569_v56 }
  0xe3   : > { %2766 = vrot.lane.b32.xlu1 %v2765_v15, %s2968_s26  ;;  %v4084_v6 = vsel %vm459_vm9, %v470_v32, %v437_v28  ;;  %v2053_v52 = vrot.slane %v2039_v8, %v3146_v24  ;;  %v2785_v27 = vpack.i.bf16 %v1273_v63, %v1811_v21  ;;  %v1804_v15 = vcombine.high %v1770_v5, %v1786_v31 }
  0xe4   : > { %v2805_v53 = vpack.i.bf16 %v1348_v50, %v1985_v14  ;;  %v1821_v57 = vcombine.high %v1811_v21, %v4569_v56  ;;  %v1352_v44 = vcombine.high %v1348_v50, %v4569_v56  ;;  %v1519_v23 = vcombine.high %v1515_v33, %v4569_v56 }
  0xe5   : > { %2756 = vrot.lane.b32.xlu0 %v2755_v25, %s2972_s29  ;;  %v2795_v3 = vpack.i.bf16 %v1515_v33, %v2053_v52  ;;  %v1989_v25 = vcombine.high %v1985_v14, %v4569_v56  ;;  %v1818_v11 = vrot.slane %v1804_v15, %v3146_v24  ;;  %v2057_v40 = vcombine.high %v2053_v52, %v4569_v56 }
  0xe6   : > { %v2160_v5 = vcombine.low %v2136_v51, %v2152_v0  ;;  %v2175_v21 = vrot.slane %v2161_v38, %v3146_v24  ;;  %v2176_v50 = vcombine.low %v2143_v2, %v2159_v22  ;;  %v2177_v15 = vcombine.high %v2143_v2, %v2159_v22  ;;  %v4615_v38 = vld [vmem:[#allocation21_spill] sm:$0xff] }
  0xe7   : > { %2776 = vrot.lane.b32.xlu1 %v2775_v12, %s2971_s10  ;;  %v1753_v12 = vcombine.high %v1743_v47, %v4569_v56  ;;  %v2820_v29 = vpack.i.bf16 %v1352_v44, %v1989_v25  ;;  %v1822_v48 = vcombine.high %v1818_v11, %v4569_v56  ;;  %v2810_v35 = vpack.i.bf16 %v1519_v23, %v2057_v40 }
  0xe8   : > { %v4150_v36 = vrot.slane %v2160_v5, %v3146_v24  ;;  %v2193_v52 = vcombine.high %v2175_v21, %v4569_v56  ;;  %vm2263_vm14 = vcmask 293888  }
  0xe9   : > { %1828 = vrot.lane.b32.xlu0 %v1734_v13, %s2967_s23  ;;  %v2592_v19 = vpop.permute.xlu0 %2591  ;;  %v1280_v13 = vrot.slane %v1266_v39, %v3146_v24 }
  0xea   : > { %v2594_v28 = vunpack.i.h.bf16 %v2592_v19  ;;  %v2593_v34 = vunpack.i.l.bf16 %v2592_v19  ;;  %v2192_v63 = vcombine.high %v4150_v36, %v4569_v56 }
  0xeb   : > { %1832 = vrot.lane.b32.xlu1 %v1752_v62, %s2968_s26  ;;  %v2800_v62 = vpack.i.bf16 %v1283_v16, %v1821_v57  ;;  %v1284_v30 = vcombine.high %v1280_v13, %v4569_v56  ;;  %v2815_v8 = vpack.i.bf16 %v1280_v13, %v1818_v11  ;;  %v4613_v11 = vld [vmem:[#allocation14_spill] sm:$0xff] }
  0xed   : > { %2771 = vrot.lane.b32.xlu0 %v2770_v43, %s2970_s7  ;;  %v2825_v37 = vpack.i.bf16 %v1284_v30, %v1822_v48 }
  0xef   : > { %2791 = vrot.lane.b32.xlu1 %v2790_v61, %s2971_s10 }
  0xf0   : > { %v4125_v4 = vpop.permute.xlu1 %2586 }
  0xf1   : > { %2781 = vrot.lane.b32.xlu0 %v2780_v59, %s2973_s19  ;;  %v1736_v59 = vcombine.high %v4077_v46, %v4080_v41  ;;  %v2588_v16 = vunpack.i.l.bf16 %v4125_v4 }
  0xf2   : > { %v4121_v7 = vpop.permute.xlu0 %2611 }
  0xf3   : > { %1836 = vrot.lane.b32.xlu1 %v1743_v47, %s2970_s7  ;;  %v1750_v18 = vrot.slane %v1736_v59, %v3146_v24  ;;  %v2614_v46 = vunpack.i.h.bf16 %v4121_v7  ;;  %v2613_v41 = vunpack.i.l.bf16 %v4121_v7 }
  0xf4   : > { %v4139_v43 = vpop.permute.xlu1 %2596 }
  0xf5   : > { %2786 = vrot.lane.b32.xlu0 %v2785_v27, %s2970_s7  ;;  %v2184_v27 = vrot.slane %v2176_v50, %v3146_v24  ;;  %v1754_v58 = vcombine.high %v1750_v18, %v4569_v56  ;;  %v1182_v7 = vsel %vm455_vm7, %v4613_v11, %v2614_v46  ;;  %v2599_v23 = vunpack.i.h.bf16 %v4139_v43 }
  0xf6   : > { %v2617_v26 = vpop.permute.xlu0 %2616 }
  0xf7   : > { %2806 = vrot.lane.b32.xlu1 %v2805_v53, %s2972_s29  ;;  %v2619_v31 = vunpack.i.h.bf16 %v2617_v26  ;;  %v2618_v32 = vunpack.i.l.bf16 %v2617_v26  ;;  %v2589_v53 = vunpack.i.h.bf16 %v4125_v4  ;;  %v2598_v4 = vunpack.i.l.bf16 %v4139_v43 }
  0xf8   : > { %v2194_v40 = vcombine.high %v2184_v27, %v4569_v56 }
  0xf9   : > { %2796 = vrot.lane.b32.xlu0 %v2795_v3, %s2972_s29  ;;  %v1175_v60 = vsel %vm455_vm7, %v4610_v10, %v2619_v31  ;;  %v705_v61 = vsel %vm455_vm7, %v4611_v54, %v2618_v32  ;;  %v1183_v32 = vsel %vm457_vm8, %v1182_v7, %v2589_v53 }
  0xfa   : > { %v706_v1 = vsel %vm457_vm8, %v705_v61, %v2593_v34  ;;  %v1176_v45 = vsel %vm457_vm8, %v1175_v60, %v2594_v28 }
  0xfb   : > { %1840 = vrot.lane.b32.xlu1 %v1753_v12, %s2971_s10  ;;  %v4614_v12 = vld [vmem:[#allocation12_spill] sm:$0xff] }
  0xfc   : > { %v712_v51 = vsel %vm455_vm7, %v4614_v12, %v2613_v41 }
  0xfd   : > { %2801 = vrot.lane.b32.xlu0 %v2800_v62, %s2971_s10  ;;  %v713_v31 = vsel %vm457_vm8, %v712_v51, %v2588_v16 }
  0xfe   : > { %v4161_v47 = vpop.permute.xlu1 %2601 }
  0xff   : > { %2821 = vrot.lane.b32.xlu1 %v2820_v29, %s2973_s19  ;;  %v2604_v14 = vunpack.i.h.bf16 %v4161_v47  ;;  %v2191_v29 = vrot.slane %v2177_v15, %v3146_v24 }
 0x100   : > { %v4164_v19 = vpop.permute.xlu0 %2626 }
 0x101   : > { %2811 = vrot.lane.b32.xlu0 %v2810_v35, %s2973_s19  ;;  %v2629_v33 = vunpack.i.h.bf16 %v4164_v19  ;;  %v2195_v43 = vcombine.high %v2191_v29, %v4569_v56  ;;  %v4616_v56 = vld [vmem:[#allocation18_spill] sm:$0xff] }
 0x102   : > { %v2607_v39 = vpop.permute.xlu1 %2606 }
 0x103   : > { %2826 = vrot.lane.b32.xlu1 %v2825_v37, %s2973_s19  ;;  %v456_v3 = vsel %vm455_vm7, %v4612_v17, %v2629_v33  ;;  %v2609_v57 = vunpack.i.h.bf16 %v2607_v39  ;;  %v2608_v44 = vunpack.i.l.bf16 %v2607_v39 }
 0x104   : > { %v2632_v25 = vpop.permute.xlu0 %2631  ;;  %v4180_v13 = vsel %vm457_vm8, %v456_v3, %v2604_v14  ;;  %v4617_v3 = vld [vmem:[#allocation25_spill] sm:$0xff] }
 0x105   : > { %2816 = vrot.lane.b32.xlu0 %v2815_v8, %s2972_s29  ;;  %v2634_v0 = vunpack.i.h.bf16 %v2632_v25  ;;  %v2633_v62 = vunpack.i.l.bf16 %v2632_v25 }
 0x106   : > { %v2622_v30 = vpop.permute.xlu1 %2621 }
 0x107   : > { %2197 = vrot.lane.b32.xlu1 %v2192_v63, %s2969_s4  ;;  %v707_v48 = vsel %vm459_vm9, %v706_v1, %v2633_v62  ;;  %v1177_v26 = vsel %vm459_vm9, %v1176_v45, %v2634_v0  ;;  %v2624_v20 = vunpack.i.h.bf16 %v2622_v30  ;;  %v2623_v5 = vunpack.i.l.bf16 %v2622_v30 }
 0x108   : > { %v4197_v55 = vsel %vm461_vm10, %v707_v48, %v2608_v44  ;;  %v4200_v28 = vsel %vm461_vm10, %v1177_v26, %v2609_v57  ;;  %v2603_v48 = vunpack.i.l.bf16 %v4161_v47 }
 0x109   : > { %1844 = vrot.lane.b32.xlu0 %v1750_v18, %s2972_s29  ;;  %v714_v24 = vsel %vm459_vm9, %v713_v31, %v2623_v5  ;;  %v1184_v34 = vsel %vm459_vm9, %v1183_v32, %v2624_v20  ;;  %v4618_v5 = vld [vmem:[#allocation17_spill] sm:$0xff] }
 0x10a   : > { %v715_v10 = vsel %vm461_vm10, %v714_v24, %v2598_v4  ;;  %v1185_v60 = vsel %vm461_vm10, %v1184_v34, %v2599_v23  ;;  %v2628_v23 = vunpack.i.l.bf16 %v4164_v19 }
 0x10b   : > { %2205 = vrot.lane.b32.xlu1 %v2193_v52, %s2968_s26 }
 0x10c   : > { %v947_v31 = vsel %vm455_vm7, %v4618_v5, %v2628_v23 }
 0x10d   : > { %1848 = vrot.lane.b32.xlu0 %v1754_v58, %s2973_s19  ;;  %v2647_v54 = vpop.permute.xlu1 %2646  ;;  %v948_v47 = vsel %vm457_vm8, %v947_v31, %v2603_v48 }
 0x10e   : > { %v2649_v35 = vunpack.i.h.bf16 %v2647_v54  ;;  %v2648_v37 = vunpack.i.l.bf16 %v2647_v54 }
 0x10f   : > { %2213 = vrot.lane.b32.xlu1 %v2194_v40, %s2971_s10  ;;  %v2637_v61 = vpop.permute.xlu0 %2636 }
 0x110   : > { %v2639_v1 = vunpack.i.h.bf16 %v2637_v61  ;;  %v2638_v45 = vunpack.i.l.bf16 %v2637_v61 }
 0x111   : > { %2201 = vrot.lane.b32.xlu0 %v2175_v21, %s2967_s23  ;;  %s2892_s23 = sshll.u32 %s2974_s17, 4  ;;  %s2893_s23 = int_to_ptr.vmem [resolvable:$false] %s2892_s23 }
 0x112   : > { %v1651_v2 = vsel %vm455_vm7, %v4615_v38, %v2639_v1  ;;  %v940_v22 = vsel %vm455_vm7, %v4616_v56, %v2638_v45  ;;  %s2894_s26 = scalar_lea.vmem %s2893_s23, 512  ;;  %p2895_p5 = scmp.lt.s32.totalorder %s4467_s22, %s2893_s23 }
 0x113   : > { %2221 = vrot.lane.b32.xlu1 %v2195_v43, %s2973_s19  ;;  %v1652_v8 = vsel %vm457_vm8, %v1651_v2, %v2649_v35  ;;  %v4218_v59 = vsel %vm457_vm8, %v940_v22, %v2648_v37  ;;  %v2642_v63 = vpop.permute.xlu0 %2641  ;;  %p2896_p0 = scmp.lt.s32.totalorder %s2894_s26, %s2888_s5 }
 0x114   : > { %v2643_v4 = vunpack.i.l.bf16 %v2642_v63  ;;  %v2644_v26 = vunpack.i.h.bf16 %v2642_v63 }
 0x115   : > { %2209 = vrot.lane.b32.xlu0 %v2184_v27, %s2970_s7  ;;  %p2897_p6 = por %p2896_p0, %p2895_p5 }
 0x116   : > { %v716_v32 = vsel %vm463_vm11, %v715_v10, %v2643_v4  ;;  %v1186_v54 = vsel %vm463_vm11, %v1185_v60, %v2644_v26 }
 0x117   : > { %v4221_v21 = vpop.permute.xlu0 %2651  ;;  %p2898_p13 = pnand %p2897_p6, %p2891_p4 }
 0x118   : > { %v2654_v37 = vunpack.i.h.bf16 %v4221_v21  ;;  %v2653_v1 = vunpack.i.l.bf16 %v4221_v21 }
 0x119   : > { %2217 = vrot.lane.b32.xlu0 %v2191_v29, %s2972_s29 }
 0x11a   : > { %v4223_v50 = vpop.permute.xlu1 %2656 }
 0x11b   : > { %v2659_v15 = vunpack.i.h.bf16 %v4223_v50 }
 0x11c   : > { %v441_v14 = vpop.permute.xlu0 %440 }
 0x11d   : > { %v1644_v16 = vsel %vm455_vm7, %v4617_v3, %v2659_v15  ;;  %v472_v10 = vsel %vm461_vm10, %v4084_v6, %v441_v14 }
 0x11e   : > { %v4225_v18 = vpop.permute.xlu1 %2661 }
 0x11f   : > { %v2663_v19 = vunpack.i.l.bf16 %v4225_v18 }
 0x120   : > { %v2667_v46 = vpop.permute.xlu0 %2666 }
 0x121   : > { %v2668_v29 = vunpack.i.l.bf16 %v2667_v46  ;;  %v2669_v61 = vunpack.i.h.bf16 %v2667_v46  ;;  %v709_v38 = vsel %vm463_vm11, %v4197_v55, %v2663_v19 }
 0x123   : > { %v717_v34 = vsel %vm465_vm12, %v716_v32, %v2668_v29  ;;  %v1187_v6 = vsel %vm465_vm12, %v1186_v54, %v2669_v61 }
 0x125   : > { %v4227_v41 = vpop.permute.xlu1 %2671 }
 0x126   : > { %v2674_v33 = vunpack.i.h.bf16 %v4227_v41  ;;  %v4233_v27 = vpop.permute.xlu0 %2676 }
 0x127   : > { %v2678_v63 = vunpack.i.l.bf16 %v4233_v27 }
 0x128   : > { %v4231_v52 = vsel %vm459_vm9, %v1652_v8, %v2674_v33  ;;  %v2679_v8 = vunpack.i.h.bf16 %v4233_v27  ;;  %v460_v27 = vsel %vm459_vm9, %v4180_v13, %v2654_v37 }
 0x129   : > { %v4235_v39 = vpop.permute.xlu1 %2681 }
 0x12a   : > { %v4238_v53 = vpop.permute.xlu0 %2686  ;;  %v462_v4 = vsel %vm461_vm10, %v460_v27, %v2679_v8  ;;  %v2673_v8 = vunpack.i.l.bf16 %v4227_v41 }
 0x12b   : > { %v2689_v17 = vunpack.i.h.bf16 %v4238_v53 }
 0x12c   : > { %v942_v41 = vsel %vm459_vm9, %v4218_v59, %v2673_v8 }
 0x12d   : > { %v445_v58 = vpop.permute.xlu1 %444  ;;  %v4244_v57 = vsel %vm457_vm8, %v1644_v16, %v2689_v17 }
 0x12e   : > { %v4246_v25 = vpop.permute.xlu0 %2691  ;;  %v473_v2 = vsel %vm463_vm11, %v472_v10, %v445_v58 }
 0x12f   : > { %v2693_v45 = vunpack.i.l.bf16 %v4246_v25 }
 0x131   : > { %v2697_v44 = vpop.permute.xlu1 %2696  ;;  %v710_v58 = vsel %vm465_vm12, %v709_v38, %v2693_v45 }
 0x132   : > { %v4250_v12 = vpop.permute.xlu0 %2701  ;;  %v2698_v20 = vunpack.i.l.bf16 %v2697_v44  ;;  %v2699_v60 = vunpack.i.h.bf16 %v2697_v44  ;;  %v949_v44 = vsel %vm459_vm9, %v948_v47, %v2653_v1 }
 0x133   : > { %v950_v29 = vsel %vm461_vm10, %v949_v44, %v2678_v63 }
 0x134   : > { %v718_v35 = vsel %vm467_vm13, %v717_v34, %v2698_v20 }
 0x135   : > { %v2707_v11 = vpop.permute.xlu1 %2706  ;;  %v2234_v33 = vrot.slane %v718_v35, 4 }
 0x136   : > { %v2709_v14 = vunpack.i.h.bf16 %v2707_v11  ;;  %v2708_v15 = vunpack.i.l.bf16 %v2707_v11  ;;  %v1188_v11 = vsel %vm467_vm13, %v1187_v6, %v2699_v60  ;;  %v2664_v60 = vunpack.i.h.bf16 %v4225_v18 }
 0x137   : > { %v2240_v34 = vrot.slane %v1188_v11, 4 }
 0x138   : > { %v464_v26 = vsel %vm463_vm11, %v462_v4, %v2709_v14  ;;  %v951_v20 = vsel %vm463_vm11, %v950_v29, %v2708_v15  ;;  %v4619_v29 = vld [vmem:[#allocation26_spill] sm:$0xff] }
 0x139   : > { %v4248_v7 = vpop.permute.xlu1 %2716 }
 0x13a   : > { %v2719_v59 = vunpack.i.h.bf16 %v4248_v7 }
 0x13d   : > { %v449_v51 = vpop.permute.xlu1 %448 }
 0x13e   : > { %v474_v21 = vsel %vm465_vm12, %v473_v2, %v449_v51 }
 0x13f   : > { %v4252_v0 = vpop.permute.xlu0 %2711 }
 0x141   : > { %v4254_v62 = vpop.permute.xlu1 %2731 }
 0x142   : > { %v2733_v6 = vunpack.i.l.bf16 %v4254_v62 }
 0x143   : > { %v4257_v40 = vpop.permute.xlu0 %2721 }
 0x145   : > { %v4259_v30 = vpop.permute.xlu1 %1824 }
 0x147   : > { %v4266_v24 = vpop.permute.xlu0 %2726 }
 0x148   : > { %v2728_v56 = vunpack.i.l.bf16 %v4266_v24  ;;  %v2729_v63 = vunpack.i.h.bf16 %v4266_v24 }
 0x149   : > { %v4269_v43 = vpop.permute.xlu1 %2746 }
 0x14a   : > { %v711_v51 = vsel %vm467_vm13, %v710_v58, %v2728_v56  ;;  %v2684_v58 = vunpack.i.h.bf16 %v4235_v39  ;;  %v2749_v8 = vunpack.i.h.bf16 %v4269_v43 }
 0x14b   : > { %v2737_v22 = vpop.permute.xlu0 %2736  ;;  %v2233_v13 = vrot.slane %v711_v51, 4 }
 0x14c   : > { %v2739_v17 = vunpack.i.h.bf16 %v2737_v22  ;;  %v2738_v3 = vunpack.i.l.bf16 %v2737_v22  ;;  %v2694_v22 = vunpack.i.h.bf16 %v4246_v25  ;;  %v2658_v25 = vunpack.i.l.bf16 %v4223_v50 }
 0x14d   : > { %v453_v46 = vpop.permute.xlu1 %452  ;;  %v2704_v50 = vunpack.i.h.bf16 %v4250_v12 }
 0x14e   : > { %v4288_v55 = vsel %vm467_vm13, %v474_v21, %v453_v46  ;;  %v466_v32 = vsel %vm465_vm12, %v464_v26, %v2739_v17  ;;  %v952_v19 = vsel %vm465_vm12, %v951_v20, %v2738_v3  ;;  %v2703_v21 = vunpack.i.l.bf16 %v4250_v12 }
 0x14f   : > { %v2256_v16 = vsel %vm230_vm0, %v4288_v55, %v2234_v33  ;;  %v4297_v23 = vpop.permute.xlu0 %2741  ;;  %v1179_v33 = vsel %vm463_vm11, %v4200_v28, %v2664_v60  ;;  %v2683_v3 = vunpack.i.l.bf16 %v4235_v39  ;;  %v2718_v26 = vunpack.i.l.bf16 %v4248_v7 }
 0x150   : > { %v1180_v18 = vsel %vm465_vm12, %v1179_v33, %v2694_v22  ;;  %v943_v17 = vsel %vm461_vm10, %v942_v41, %v2703_v21  ;;  %v2734_v7 = vunpack.i.h.bf16 %v4254_v62  ;;  %v2723_v60 = vunpack.i.l.bf16 %v4257_v40 }
 0x151   : > { %v2762_v48 = vpop.permute.xlu1 %2761  ;;  %v1181_v24 = vsel %vm467_vm13, %v1180_v18, %v2729_v63  ;;  %v944_v27 = vsel %vm463_vm11, %v943_v17, %v2733_v6  ;;  %v2748_v63 = vunpack.i.l.bf16 %v4269_v43  ;;  %v2744_v21 = vunpack.i.h.bf16 %v4297_v23 }
 0x152   : > { %v2764_v5 = vunpack.i.h.bf16 %v2762_v48  ;;  %v2763_v31 = vunpack.i.l.bf16 %v2762_v48  ;;  %v2239_v11 = vrot.slane %v1181_v24, 4  ;;  %v2121_v48 = vsel %vm455_vm7, %v4619_v29, %v2658_v25 }
 0x153   : > { %v4306_v54 = vpop.permute.xlu0 %2751  ;;  %v1879_v43 = vsel %vm455_vm7, %v3961_v9, %v4259_v30 }
 0x154   : > { %v953_v47 = vsel %vm467_vm13, %v952_v19, %v2763_v31  ;;  %v468_v61 = vsel %vm467_vm13, %v466_v32, %v2764_v5  ;;  %v2714_v5 = vunpack.i.h.bf16 %v4252_v0  ;;  %v2713_v31 = vunpack.i.l.bf16 %v4252_v0  ;;  %v4621_v32 = vld [vmem:[#allocation32_spill] sm:$0xff] }
 0x155   : > { %v4310_v35 = vpop.permute.xlu1 %2766  ;;  %v2258_v37 = vsel %vm230_vm0, %v953_v47, %v2240_v34  ;;  %v2255_v1 = vsel %vm230_vm0, %v468_v61, %v2233_v13  ;;  %v2114_v19 = vsel %vm455_vm7, %v4621_v32, %v2683_v3  ;;  %v2724_v0 = vunpack.i.h.bf16 %v4257_v40 }
 0x156   : > { %v2508_v10 = vpack.c.bf16 %v2258_v37, %v2256_v16  ;;  %v2688_v16 = vunpack.i.l.bf16 %v4238_v53  ;;  %v4620_v53 = vld [vmem:[#allocation31_spill] sm:$0xff]  ;;  %v1654_v37 = vsel %vm461_vm10, %v4231_v52, %v2704_v50  ;;  %v2115_v22 = vsel %vm457_vm8, %v2114_v19, %v2718_v26 }
 0x157   : > { %v4314_v45 = vpop.permute.xlu0 %2756  ;;  %v1416_v20 = vsel %vm455_vm7, %v4620_v53, %v2684_v58  ;;  %v1886_v52 = vsel %vm455_vm7, %v3928_v49, %v2713_v31  ;;  %v1655_v40 = vsel %vm463_vm11, %v1654_v37, %v2734_v7  ;;  %v2754_v25 = vunpack.i.h.bf16 %v4306_v54 }
 0x158   : > { %2509 = vmatprep.subr.bf16.mxu0 %v2508_v10  ;;  %v2758_v15 = vunpack.i.l.bf16 %v4314_v45  ;;  %v2122_v34 = vsel %vm457_vm8, %v2121_v48, %v2688_v16  ;;  %v1417_v10 = vsel %vm457_vm8, %v1416_v20, %v2719_v59  ;;  %v2759_v62 = vunpack.i.h.bf16 %v4314_v45 }
 0x159   : > { %v4316_v38 = vpop.permute.xlu1 %2776  ;;  %v2743_v45 = vunpack.i.l.bf16 %v4297_v23  ;;  %v2123_v49 = vsel %vm459_vm9, %v2122_v34, %v2723_v60  ;;  %v1418_v24 = vsel %vm459_vm9, %v1417_v10, %v2749_v8  ;;  %v2116_v58 = vsel %vm459_vm9, %v2115_v22, %v2748_v63 }
 0x15a   : > { %v945_v4 = vsel %vm465_vm12, %v944_v27, %v2758_v15  ;;  %v1656_v9 = vsel %vm465_vm12, %v1655_v40, %v2759_v62  ;;  %v2753_v17 = vunpack.i.l.bf16 %v4306_v54  ;;  %v2768_v27 = vunpack.i.l.bf16 %v4310_v35 }
 0x15b   : > { %v4318_v2 = vpop.permute.xlu0 %1828  ;;  %v1887_v16 = vsel %vm457_vm8, %v1886_v52, %v2743_v45 }
 0x15d   : > { %v4321_v56 = vpop.permute.xlu1 %1832 }
 0x15f   : > { %v4327_v46 = vpop.permute.xlu0 %2771 }
 0x160   : > { %v2774_v18 = vunpack.i.h.bf16 %v4327_v46  ;;  %v2773_v48 = vunpack.i.l.bf16 %v4327_v46 }
 0x161   : > { %v4332_v14 = vpop.permute.xlu1 %2791 }
 0x162   : > { %v2794_v41 = vunpack.i.h.bf16 %v4332_v14  ;;  %v1419_v50 = vsel %vm461_vm10, %v1418_v24, %v2774_v18  ;;  %v1880_v18 = vsel %vm457_vm8, %v1879_v43, %v4318_v2 }
 0x163   : > { %v2782_v28 = vpop.permute.xlu0 %2781 }
 0x164   : > { %v2783_v44 = vunpack.i.l.bf16 %v2782_v28  ;;  %v2784_v33 = vunpack.i.h.bf16 %v2782_v28  ;;  %v1420_v54 = vsel %vm463_vm11, %v1419_v50, %v2794_v41 }
 0x165   : > { %v4345_v51 = vpop.permute.xlu1 %1836 }
 0x166   : > { %v946_v39 = vsel %vm467_vm13, %v945_v4, %v2783_v44  ;;  %v1657_v28 = vsel %vm467_vm13, %v1656_v9, %v2784_v33  ;;  %v2779_v44 = vunpack.i.h.bf16 %v4316_v38  ;;  %v2778_v4 = vunpack.i.l.bf16 %v4316_v38 }
 0x167   : > { %v4358_v12 = vpop.permute.xlu0 %2786  ;;  %v2257_v13 = vsel %vm230_vm0, %v946_v39, %v2239_v11  ;;  %v2246_v26 = vrot.slane %v1657_v28, 4  ;;  %v1888_v38 = vsel %vm459_vm9, %v1887_v16, %v2768_v27 }
 0x168   : > { %v2510_v47 = vpack.c.bf16 %v2257_v13, %v2255_v1  ;;  %v1409_v1 = vsel %vm455_vm7, %v3902_v42, %v2714_v5  ;;  %v1646_v42 = vsel %vm459_vm9, %v4244_v57, %v2724_v0  ;;  %v2769_v57 = vunpack.i.h.bf16 %v4310_v35 }
 0x169   : > { %v4365_v61 = vpop.permute.xlu1 %2806  ;;  %v1410_v23 = vsel %vm457_vm8, %v1409_v1, %v2744_v21  ;;  %v1647_v11 = vsel %vm461_vm10, %v1646_v42, %v2754_v25  ;;  %v2124_v35 = vsel %vm461_vm10, %v2123_v49, %v2753_v17  ;;  %v2788_v5 = vunpack.i.l.bf16 %v4358_v12 }
 0x16a   : > { %2511 = vmatpush1.bf16.msra.mxu0 %v2510_v47  ;;  %v2809_v30 = vunpack.i.h.bf16 %v4365_v61  ;;  %v1411_v20 = vsel %vm459_vm9, %v1410_v23, %v2769_v57  ;;  %v1648_v32 = vsel %vm463_vm11, %v1647_v11, %v2779_v44  ;;  %v2125_v7 = vsel %vm463_vm11, %v2124_v35, %v2778_v4 }
 0x16b   : > { %v4381_v6 = vpop.permute.xlu0 %2796  ;;  %v2793_v47 = vunpack.i.l.bf16 %v4332_v14  ;;  %v2789_v37 = vunpack.i.h.bf16 %v4358_v12  ;;  %v2117_v0 = vsel %vm461_vm10, %v2116_v58, %v2773_v48  ;;  %v2808_v22 = vunpack.i.l.bf16 %v4365_v61 }
 0x16c   : > { %v2798_v39 = vunpack.i.l.bf16 %v4381_v6  ;;  %v1421_v53 = vsel %vm465_vm12, %v1420_v54, %v2809_v30  ;;  %v1889_v63 = vsel %vm461_vm10, %v1888_v38, %v2788_v5  ;;  %v2799_v62 = vunpack.i.h.bf16 %v4381_v6 }
 0x16d   : > { %v4389_v15 = vpop.permute.xlu1 %1840  ;;  %v2118_v42 = vsel %vm463_vm11, %v2117_v0, %v2793_v47  ;;  %v1412_v61 = vsel %vm461_vm10, %v1411_v20, %v2789_v37  ;;  %v1881_v23 = vsel %vm459_vm9, %v1880_v18, %v4321_v56 }
 0x16e   : > { %v2126_v60 = vsel %vm465_vm12, %v2125_v7, %v2798_v39  ;;  %v1649_v58 = vsel %vm465_vm12, %v1648_v32, %v2799_v62  ;;  %v2119_v9 = vsel %vm465_vm12, %v2118_v42, %v2808_v22 }
 0x16f   : > { %v2802_v3 = vpop.permute.xlu0 %2801 }
 0x170   : > { %v2803_v10 = vunpack.i.l.bf16 %v2802_v3  ;;  %v2804_v8 = vunpack.i.h.bf16 %v2802_v3  ;;  %v1882_v3 = vsel %vm461_vm10, %v1881_v23, %v4345_v51 }
 0x171   : > { %v2822_v59 = vpop.permute.xlu1 %2821  ;;  %v1883_v27 = vsel %vm463_vm11, %v1882_v3, %v4389_v15 }
 0x172   : > { %v2824_v29 = vunpack.i.h.bf16 %v2822_v59  ;;  %v2823_v14 = vunpack.i.l.bf16 %v2822_v59  ;;  %v1890_v49 = vsel %vm463_vm11, %v1889_v63, %v2803_v10  ;;  %v1413_v6 = vsel %vm463_vm11, %v1412_v61, %v2804_v8 }
 0x173   : > { %v2812_v31 = vpop.permute.xlu0 %2811 }
 0x174   : > { %v1422_v13 = vsel %vm467_vm13, %v1421_v53, %v2824_v29  ;;  %v2813_v19 = vunpack.i.l.bf16 %v2812_v31  ;;  %v2814_v33 = vunpack.i.h.bf16 %v2812_v31  ;;  %v2120_v57 = vsel %vm467_vm13, %v2119_v9, %v2823_v14 }
 0x175   : > { %v2827_v46 = vpop.permute.xlu1 %2826  ;;  %v2260_v34 = vsel %vm230_vm0, %v1422_v13, %v2246_v26  ;;  %v2251_v11 = vrot.slane %v2120_v57, 4 }
 0x176   : > { %v2127_v1 = vsel %vm467_vm13, %v2126_v60, %v2813_v19  ;;  %v2828_v21 = vunpack.i.l.bf16 %v2827_v46  ;;  %v2829_v24 = vunpack.i.h.bf16 %v2827_v46  ;;  %v1650_v17 = vsel %vm467_vm13, %v1649_v58, %v2814_v33 }
 0x177   : > { %v2817_v52 = vpop.permute.xlu0 %2816  ;;  %v2252_v25 = vrot.slane %v2127_v1, 4  ;;  %v2245_v59 = vrot.slane %v1650_v17, 4 }
 0x178   : > { %v2819_v40 = vunpack.i.h.bf16 %v2817_v52  ;;  %v2818_v12 = vunpack.i.l.bf16 %v2817_v52 }
 0x179   : > { %v2198_v45 = vpop.permute.xlu1 %2197 }
 0x17a   : > { %v1891_v41 = vsel %vm465_vm12, %v1890_v49, %v2818_v12  ;;  %v1414_v30 = vsel %vm465_vm12, %v1413_v6, %v2819_v40  ;;  %v2224_v26 = vsel %vm455_vm7, %v4150_v36, %v2198_v45  ;;  %v213_v36 = vld [vmem:[#allocation5] sm:$0xff] }
 0x17b   : > { %v1892_v2 = vsel %vm467_vm13, %v1891_v41, %v2828_v21  ;;  %v1845_v43 = vpop.permute.xlu0 %1844  ;;  %v1415_v44 = vsel %vm467_vm13, %v1414_v30, %v2829_v24 }
 0x17c   : > { %v2262_v28 = vsel %vm230_vm0, %v1892_v2, %v2252_v25  ;;  %v1884_v56 = vsel %vm465_vm12, %v1883_v27, %v1845_v43  ;;  %v2259_v48 = vsel %vm230_vm0, %v1415_v44, %v2245_v59 }
 0x17d   : > { %v2512_v16 = vpack.c.bf16 %v2262_v28, %v2260_v34  ;;  %v2206_v50 = vpop.permute.xlu1 %2205 }
 0x17f   : > { %v1849_v4 = vpop.permute.xlu0 %1848  ;;  %2513 = vmatprep.subr.bf16.mxu0 %v2512_v16 }
 0x180   : > { %v1885_v54 = vsel %vm467_vm13, %v1884_v56, %v1849_v4 }
 0x181   : > { %v2261_v29 = vsel %vm230_vm0, %v1885_v54, %v2251_v11  ;;  %v2214_v53 = vpop.permute.xlu1 %2213 }
 0x182   : > { %v2514_v51 = vpack.c.bf16 %v2261_v29, %v2259_v48 }
 0x183   : > { %v2202_v15 = vpop.permute.xlu0 %2201 }
 0x184   : > { %v2225_v39 = vsel %vm457_vm8, %v2224_v26, %v2202_v15  ;;  %2515 = vmatpush1.bf16.msra.mxu0 %v2514_v51 }
 0x185   : > { %v2226_v35 = vsel %vm459_vm9, %v2225_v39, %v2206_v50  ;;  %v2222_v31 = vpop.permute.xlu1 %2221 }
 0x187   : > { %v2210_v20 = vpop.permute.xlu0 %2209 }
 0x188   : > { %v2227_v5 = vsel %vm461_vm10, %v2226_v35, %v2210_v20 }
 0x189   : > { %v2228_v13 = vsel %vm463_vm11, %v2227_v5, %v2214_v53 }
 0x18b   : > { %v2218_v38 = vpop.permute.xlu0 %2217 }
 0x18c   : > { %v2229_v32 = vsel %vm465_vm12, %v2228_v13, %v2218_v38 }
 0x18d   : > { %v2230_v19 = vsel %vm467_vm13, %v2229_v32, %v2222_v31 }
 0x18e   : > { %2498 = vmatprep.subr.msk.mxu0 %vm230_vm0, %v2230_v19 }
 0x18f   : > { %2499 = vmatpush1.msk.msra.mxu0 %vm230_vm0, %v4288_v55 }
 0x190   : > { %2500 = vmatmul.mubr.msk.f32.vlgmr.msra.gmra.mrb[0].mxu0 %vm2263_vm14, %v213_v36 }
 0x263   : > { %v2339_v46 = vpop.f32.mrb[0].mxu0 }
 0x264   : > { %2344 = vst [vmem:[%s202_s30] sm:$0xff] %v2339_v46  ;;  %v2341_v34 = vpop.f32.mrb[1].mxu0  ;;  %v2350_v7 = vmul.f32 %v2339_v46, %v2339_v46 }
 0x265   : > { %2345 = vst [vmem:[%s202_s30 + $0x8] sm:$0xff] %v2341_v34  ;;  %v2351_v47 = vmul.f32 %v2341_v34, %v2341_v34  ;;  %v2346_v37 = vadd.f32 %v2341_v34, %v2339_v46 }
 0x267   : > { %2347 = vadd.xlane.f32.xlu0 %v2346_v37  ;;  %v2352_v10 = vadd.f32 %v2351_v47, %v2350_v7 }
 0x269   : > { %2353 = vadd.xlane.f32.xlu1 %v2352_v10 }
 0x26a   : > { %2901 = shalt.err (!%p2898_p13)
}
 0x26b   : > { %s2902_s4 = scalar_lea.hbm %s2377_s9, 256  ;;  %s2906_s10 = scalar_lea.hbm %s4515_s2, 512 }
 0x26c   : > { %p2903_p7 = scmp.ne.s32.totalorder %s2377_s9, %s2902_s4  ;;  %p2907_p1 = scmp.lt.u32.totalorder %s2377_s9, %s4515_s2 }
 0x26d   : > { %p2908_p8 = scmp.lt.u32.totalorder %s2906_s10, %s2902_s4  ;;  %p2910_p9 = scmp.lt.u32.totalorder %s2902_s4, %s2377_s9 }
 0x26e   : > { %p2904_p3 = pnand %p2903_p7, %p4622_p10 }
 0x26f   : > { %p2909_p11 = por %p2908_p8, %p2907_p1 }
 0x270   : > { %p2905_p12 = pneg %p2904_p3 }
 0x271   : > { %p2911_p2 = por %p2910_p9, %p2909_p11 }
 0x273   : > { %p2912_p4 = pnand %p2911_p2, %p2905_p12 }
 0x275   : > { %2915 = shalt.err (!%p2912_p4)
}
 0x276   : > { %2522 = dma.vmem_to_hbm [thread:$0]  (%p4622_p10), %s4467_s22, 256, %s2377_s9, %s2361_s28   ;;  %vm2356_vm15 = vcmask 7168   ;;  %vm2358_vm0 = vcmask 15360  }
 0x277   : > { %p209_p5 = scmp.lt.s32.totalorder %s3016_s16, 1 }
 0x279   : > { %s4630_s16 = smov (!%p209_p5, %s3016_s16), 1 }
 0x27a   : > { %s2497_s20 = sshll.u32 %s4630_s16, 3 }
 0x27b   : > { %s212_s6 = scalar_lea.vmem %s4516_s3, %s2497_s20 }
 0x2f4   : > { %v2348_v55 = vpop.xlane.xlu0 %2347 }
 0x2f6   : > { %v2354_v0 = vpop.xlane.xlu1 %2353 }
 0x2f7   : > { %v2357_v60 = vsel %vm2356_vm15, %v2348_v55, %v2354_v0 }
 0x2f8   : > { %2359 = vst.msk [vmem:[%s212_s6] sm:$0xff] %vm2358_vm0, %v2357_v60 }
 0x2f9 PF: > { %s2394_s24 = sand.u32 1, %s2946_s12   ;;  %p4623_p0 = scmp.ne.s32.totalorder %s4552_s25, 0 }
 0x2fa   : > { %p4624_p10 = scmp.ge.s32.totalorder %s2958_s15, 2  ;;  %s2395_s22 = scalar_lea.sflag [#allocation4], %s2394_s24 }
 0x2fc   : > { %p2533_p6 = pnand %p4624_p10, %p4623_p0 }
 0x2fe   : > { %2941 = dma.done.wait (!%p2533_p6), %s2395_s22, 256  }
 0x2ff   : > { %2943 = vsyncadd (!%p2533_p6), %s2395_s22, 4294967040  ;;  %p18_p13 = scmp.ge.s32.totalorder %s3020_s18, 4   ;;  %s4625_s12 = smov %s2950_s13 }
 0x300   : > { %s4626_s13 = smov %s2954_s14  ;;  %s4627_s14 = smov %s3032_s21 }
 0x301   : > { %s4628_s15 = smov %s3020_s18  ;;  %20 = sbr.rel (!%p18_p13) target bundleno = 6 (0x6), region = 89 }
 0x308   :  { %2407 = vsyncpa [#allocation3], 1 }
 0x309   :  { %2409 = vsyncpa [#allocation3 + $0x1], 1 }
 0x30a   :  { %2410 = vsyncpa [#allocation6], 1 }
 0x30b   :  { %2411 = vsyncpa [#allocation4], 1 }
 0x30c   :  { %2413 = vsyncpa [#allocation4 + $0x1], 1 }

</bundles_post_ra>
